<compile_context>
chip_gen: v6e
topology: v6e:2x2x1
jax: 0.10.0
libtpu: 0.0.40
codegen_flags: <defaults>
</compile_context>

<pallas_src>
import jax
import jax.numpy as jnp
from jax import lax
from jax.experimental import pallas as pl
from jax.experimental.pallas import tpu as pltpu


def _lsa_kernel(len_ref,    # (BB, 1)   int32  valid lengths
                qb_ref,     # (BB, U, 1) f32   query projection + (bconv + b)
                pk_ref,     # (BB, U, T)       proj_key^T (set_memory product)
                prev_ref,   # (BB, T)   f32    previous alignments
                mem_ref,    # (BB, T, D)       encoder memory (values)
                wconv_ref,  # (3, U, 1) f32    conv taps for prev[t-1], prev[t], prev[t+1]
                vw_ref,     # (1, U, 1) f32    v.weight
                ctx_ref,    # (BB, 1, D) f32   context out
                attn_ref):  # (BB, T)   f32    attention weights out (lane dense)
    BB, enc_T = prev_ref.shape

    prev = prev_ref[...]                                            # (BB, T)
    pos = lax.broadcasted_iota(jnp.int32, (BB, enc_T), 1)

    # Conv1d(k=3, pad=1) taps via lane rotation (XLU) + edge masking.
    prev_m1 = jnp.where(pos == 0, 0.0,
                        pltpu.roll(prev, shift=1, axis=1))           # prev[t-1]
    prev_p1 = jnp.where(pos == enc_T - 1, 0.0,
                        pltpu.roll(prev, shift=enc_T - 1, axis=1))   # prev[t+1]

    wc = wconv_ref[...]                                              # (3, U, 1)
    # weights in (BB, U, T) layout: enc_T stays on the lane axis.
    w = (pk_ref[...].astype(jnp.float32)
         + qb_ref[...]                                               # lane-broadcast over T
         + wc[0:1] * prev_m1[:, None, :]
         + wc[1:2] * prev[:, None, :]
         + wc[2:3] * prev_p1[:, None, :])
    th = jnp.tanh(w)

    # score = v(tanh(weights)); v bias dropped (constant shift cancels in softmax).
    score = jnp.sum(th * vw_ref[...], axis=1)                        # (BB, T)

    # masked_fill_(mask, -inf) -> large finite negative (NaN-safe for padded rows).
    score = jnp.where(pos >= len_ref[...], -1e30, score)

    # softmax over enc_T (lane axis): one exact reciprocal per row, broadcast mul.
    # TODO(synk): smoothing=True branch (sigmoid / sum normalization) not implemented;
    # module default is smoothing=False.
    m = jnp.max(score, axis=-1, keepdims=True)
    e = jnp.exp(score - m)
    denom = jnp.sum(e, axis=-1, keepdims=True)
    attn = e * pl.reciprocal(denom, approx=False)                    # (BB, T)
    attn_ref[...] = attn

    # context = bmm(attn, memory): batched MXU matmul, f32 accumulation.
    ctx_ref[...] = jnp.einsum(
        'bqt,btd->bqd', attn[:, None, :].astype(mem_ref.dtype), mem_ref[...],
        preferred_element_type=jnp.float32).astype(ctx_ref.dtype)


def _round_up(x, m):
    return ((x + m - 1) // m) * m


def lsa_set_memory(memory, lengths, params, *, value_dtype=jnp.float32):
    """PyTorch set_memory(): cache the decode-step-invariant tensors.

    Call once per utterance; the returned dict is reused by every
    location_sensitive_attention() call so the key projection is not recomputed
    per decode step.  value_dtype=jnp.bfloat16 halves the HBM value stream
    (validate against a relaxed tolerance if used).
    """
    f32 = jnp.float32
    B, enc_T, _ = memory.shape
    mem_f32 = memory.astype(f32)
    proj_key_t = jnp.einsum('ud,btd->but', params["wk"].astype(f32), mem_f32)  # (B,U,T)
    if lengths is None:
        lengths = jnp.full((B,), enc_T, dtype=jnp.int32)
    return {
        "memory": mem_f32.astype(value_dtype),   # value stream for bmm(attn, memory)
        "proj_key_t": proj_key_t,                # kept f32 (feeds tanh/score path)
        "lengths": lengths.astype(jnp.int32),
    }


def location_sensitive_attention(state, queries, prev_align, params, *, block_b=None):
    """PyTorch forward(): returns (context (B,1,enc_dim), attn_weight (B,enc_T))."""
    f32 = jnp.float32
    memory = state["memory"]
    proj_key_t = state["proj_key_t"]
    lengths = state["lengths"]
    B, enc_T, enc_dim = memory.shape
    num_units = proj_key_t.shape[1]

    # ---- tiny per-step projection (M=1 matmul, left to XLA); bconv + b folded in ----
    q_proj_b = (queries.astype(f32)[:, 0, :] @ params["wq"].astype(f32).T
                + params["bconv"].astype(f32) + params["b"].astype(f32))[:, :, None]
    wconv3 = params["wconv"].astype(f32).reshape(num_units, 3).T[:, :, None]   # (3,U,1)
    vw = params["vw"].astype(f32).reshape(1, num_units, 1)
    prev = prev_align.astype(f32)

    # ---- generation-aware VMEM budget & batch tile ----
    try:
        vmem_cap = int(pltpu.get_tpu_info().vmem_capacity_bytes)
    except Exception:
        vmem_cap = 64 * 1024 * 1024            # v7x-safe fallback
    vmem_limit = min(int(vmem_cap * 0.8), 112 * 1024 * 1024)

    mem_b = jnp.dtype(memory.dtype).itemsize
    pk_b = jnp.dtype(proj_key_t.dtype).itemsize
    streamed = (enc_T * enc_dim * mem_b            # memory block
                + num_units * enc_T * pk_b         # proj_key^T block
                + 2 * enc_T * 4                    # prev in + attn out
                + enc_dim * 4 + num_units * 4 + 4) # ctx out, q_proj, length
    interm = (3 * num_units * enc_T + 6 * enc_T) * 4   # w / tanh / score temporaries
    per_b_bytes = 2 * streamed + interm                # streamed blocks double-buffered
    budget = vmem_limit - (2 << 20)
    max_bb = max(8, (budget // per_b_bytes) // 8 * 8)

    B8 = _round_up(B, 8)
    BB = min(max_bb, B8)
    if block_b is not None:
        BB = max(8, min(BB, _round_up(block_b, 8)))
    if BB >= B8 and B8 >= 16:
        # keep >= 2 grid steps so both v7x TensorCores get a share of the batch axis
        BB = max(8, _round_up(B8 // 2, 8))
    grid_n = pl.cdiv(B8, BB)
    B_pad = grid_n * BB
    # TODO(synk): for very long encoders where even 8 rows exceed VMEM, add an enc_T
    # grid axis with an online-softmax accumulator instead of shrinking BB below 8.
    vmem_limit = int(min(max(vmem_limit, BB * per_b_bytes + (2 << 20)),
                         int(vmem_cap * 0.9)))

    # Pad only the tiny per-row tensors; the dominant streams (memory, proj_key^T)
    # are left unpadded and the batch tail is covered by partial blocks.
    def pad_rows(x, rows):
        if rows == x.shape[0]:
            return x
        return jnp.pad(x, ((0, rows - x.shape[0]),) + ((0, 0),) * (x.ndim - 1))

    lengths2 = pad_rows(lengths.reshape(B, 1), B_pad)
    q_proj_b = pad_rows(q_proj_b, B_pad)
    prev = pad_rows(prev, B_pad)
    if B < BB:   # only in the tiny-batch case; the copies are negligible there
        memory = pad_rows(memory, BB)
        proj_key_t = pad_rows(proj_key_t, BB)

    ctx, attn = pl.pallas_call(
        _lsa_kernel,
        out_shape=(jax.ShapeDtypeStruct((B_pad, 1, enc_dim), f32),
                   jax.ShapeDtypeStruct((B_pad, enc_T), f32)),
        grid_spec=pltpu.PrefetchScalarGridSpec(
            num_scalar_prefetch=0,
            grid=(grid_n,),
            in_specs=[
                pl.BlockSpec((BB, 1), lambda i: (i, 0)),                     # lengths
                pl.BlockSpec((BB, num_units, 1), lambda i: (i, 0, 0)),       # q_proj + bias
                pl.BlockSpec((BB, num_units, enc_T), lambda i: (i, 0, 0)),   # proj_key^T
                pl.BlockSpec((BB, enc_T), lambda i: (i, 0)),                 # prev_align
                pl.BlockSpec((BB, enc_T, enc_dim), lambda i: (i, 0, 0)),     # memory
                pl.BlockSpec((3, num_units, 1), lambda i: (0, 0, 0)),        # conv taps
                pl.BlockSpec((1, num_units, 1), lambda i: (0, 0, 0)),        # v.weight
            ],
            out_specs=[
                pl.BlockSpec((BB, 1, enc_dim), lambda i: (i, 0, 0)),
                pl.BlockSpec((BB, enc_T), lambda i: (i, 0)),
            ],
        ),
        compiler_params=pltpu.CompilerParams(
            dimension_semantics=("parallel",),
            vmem_limit_bytes=vmem_limit),
    )(lengths2, q_proj_b, proj_key_t, prev, memory, wconv3, vw)

    return ctx[:B], attn[:B]


def reference(queries, memory, prev_align, lengths, params):
    """Pure-JAX reference mirroring the PyTorch forward."""
    proj_key = memory @ params["wk"].T
    q_proj = queries @ params["wq"].T
    conv = lax.conv_general_dilated(
        prev_align[:, None, :], params["wconv"], window_strides=(1,),
        padding=((1, 1),), dimension_numbers=("NCH", "OIH", "NCH"))
    conv = conv + params["bconv"][None, :, None]
    conv_attn = jnp.transpose(conv, (0, 2, 1))
    weights = q_proj + proj_key + conv_attn + params["b"]
    score = (jnp.tanh(weights) @ params["vw"].T + params["vb"])[..., 0]
    mask = jnp.arange(memory.shape[1])[None, :] >= lengths[:, None]
    score = jnp.where(mask, -jnp.inf, score)
    attn = jax.nn.softmax(score, axis=-1)
    ctx = jnp.einsum("bt,btd->bd", attn, memory)[:, None, :]
    return ctx, attn


def _run_case(key, B, enc_T, enc_dim, dec_dim, num_units, lengths):
    keys = jax.random.split(key, 10)
    conv_dim = 1  # forward(): previous_alignments.unsqueeze(1) => 1 input channel
    params = {
        "wq": jax.random.normal(keys[0], (num_units, dec_dim), jnp.float32) * 0.1,
        "wk": jax.random.normal(keys[1], (num_units, enc_dim), jnp.float32) * 0.1,
        "wconv": jax.random.normal(keys[2], (num_units, conv_dim, 3), jnp.float32) * 0.1,
        "bconv": jax.random.normal(keys[3], (num_units,), jnp.float32) * 0.1,
        "b": jax.random.uniform(keys[4], (num_units,), jnp.float32),
        "vw": jax.random.normal(keys[5], (1, num_units), jnp.float32) * 0.1,
        "vb": jax.random.normal(keys[6], (1,), jnp.float32) * 0.1,
    }
    queries = jax.random.normal(keys[7], (B, 1, dec_dim), jnp.float32)
    memory = jax.random.normal(keys[8], (B, enc_T, enc_dim), jnp.float32)
    prev_align = jax.nn.softmax(
        jax.random.normal(keys[9], (B, enc_T), jnp.float32), axis=-1)

    state = lsa_set_memory(memory, lengths, params)          # cached, per-utterance
    ctx, attn = location_sensitive_attention(state, queries, prev_align, params)
    jax.block_until_ready((ctx, attn))

    ctx_ref, attn_ref = reference(queries, memory, prev_align, lengths, params)
    assert ctx.shape == (B, 1, enc_dim) and attn.shape == (B, enc_T)
    assert jnp.allclose(ctx, ctx_ref, atol=1e-4, rtol=1e-4)
    assert jnp.allclose(attn, attn_ref, atol=1e-4, rtol=1e-4)


if __name__ == "__main__":
    root = jax.random.PRNGKey(0)
    k1, k2, kl = jax.random.split(root, 3)

    # Case 1: tiny batch (padded path, single grid step).
    _run_case(k1, B=2, enc_T=16, enc_dim=16, dec_dim=8, num_units=32,
              lengths=jnp.array([16, 10], dtype=jnp.int32))

    # Case 2: ragged batch (partial tail blocks on the unpadded memory / proj_key
    # streams, grid >= 2 steps).
    B2, T2 = 20, 48
    lengths2 = jax.random.randint(kl, (B2,), 1, T2 + 1).astype(jnp.int32)
    _run_case(k2, B=B2, enc_T=T2, enc_dim=24, dec_dim=16, num_units=40,
              lengths=lengths2)

    print("KERNEL_OK")
</pallas_src>

<mosaic_0001>
module attributes {stable_mosaic.version = 11 : i64} {
  func.func @_lsa_kernel(%arg0: i32, %arg1: memref<8x1xi32, #tpu.memory_space<vmem>>, %arg2: memref<8x32x1xf32, #tpu.memory_space<vmem>>, %arg3: memref<8x32x16xf32, #tpu.memory_space<vmem>>, %arg4: memref<8x16xf32, #tpu.memory_space<vmem>>, %arg5: memref<8x16x16xf32, #tpu.memory_space<vmem>>, %arg6: memref<3x32x1xf32, #tpu.memory_space<vmem>>, %arg7: memref<1x32x1xf32, #tpu.memory_space<vmem>>, %arg8: memref<8x1x16xf32, #tpu.memory_space<vmem>>, %arg9: memref<8x16xf32, #tpu.memory_space<vmem>>) attributes {dimension_semantics = [#tpu.dimension_semantics<parallel>], iteration_bounds = array<i64: 1>, scalar_prefetch = 0 : i64, scratch_operands = 0 : i64, tpu.core_type = #tpu.core_type<tc>, window_params = [{transform_indices = @transform_0, window_bounds = array<i64: 8, 1>}, {transform_indices = @transform_1, window_bounds = array<i64: 8, 32, 1>}, {transform_indices = @transform_2, window_bounds = array<i64: 8, 32, 16>}, {transform_indices = @transform_3, window_bounds = array<i64: 8, 16>}, {transform_indices = @transform_4, window_bounds = array<i64: 8, 16, 16>}, {pipeline_mode = #tpu.pipeline_mode<synchronous>, transform_indices = @transform_5, window_bounds = array<i64: 3, 32, 1>}, {pipeline_mode = #tpu.pipeline_mode<synchronous>, transform_indices = @transform_6, window_bounds = array<i64: 1, 32, 1>}, {transform_indices = @transform_7, window_bounds = array<i64: 8, 1, 16>}, {transform_indices = @transform_8, window_bounds = array<i64: 8, 16>}]} {
    %c0 = arith.constant 0 : index
    %c0_0 = arith.constant 0 : index
    %0 = vector.load %arg4[%c0, %c0_0] : memref<8x16xf32, #tpu.memory_space<vmem>>, vector<8x16xf32>
    %1 = tpu.iota {dimensions = array<i32: 1>} : vector<8x16xi32>
    %c0_i32 = arith.constant 0 : i32
    %2 = vector.broadcast %c0_i32 : i32 to vector<8x16xi32>
    %3 = arith.cmpi eq, %1, %2 : vector<8x16xi32>
    %c1_i32 = arith.constant 1 : i32
    %4 = tpu.dynamic_rotate %0 by %c1_i32 dim 1 : vector<8x16xf32>, i32 -> vector<8x16xf32>
    %cst = arith.constant 0.000000e+00 : f32
    %5 = vector.broadcast %cst : f32 to vector<8x16xf32>
    %6 = arith.select %3, %5, %4 : vector<8x16xi1>, vector<8x16xf32>
    %c15_i32 = arith.constant 15 : i32
    %7 = vector.broadcast %c15_i32 : i32 to vector<8x16xi32>
    %8 = arith.cmpi eq, %1, %7 : vector<8x16xi32>
    %c15_i32_1 = arith.constant 15 : i32
    %9 = tpu.dynamic_rotate %0 by %c15_i32_1 dim 1 : vector<8x16xf32>, i32 -> vector<8x16xf32>
    %cst_2 = arith.constant 0.000000e+00 : f32
    %10 = vector.broadcast %cst_2 : f32 to vector<8x16xf32>
    %11 = arith.select %8, %10, %9 : vector<8x16xi1>, vector<8x16xf32>
    %c0_3 = arith.constant 0 : index
    %c0_4 = arith.constant 0 : index
    %c0_5 = arith.constant 0 : index
    %12 = vector.load %arg6[%c0_3, %c0_4, %c0_5] : memref<3x32x1xf32, #tpu.memory_space<vmem>>, vector<3x32x1xf32>
    %c0_6 = arith.constant 0 : index
    %c0_7 = arith.constant 0 : index
    %c0_8 = arith.constant 0 : index
    %13 = vector.load %arg3[%c0_6, %c0_7, %c0_8] : memref<8x32x16xf32, #tpu.memory_space<vmem>>, vector<8x32x16xf32>
    %c0_9 = arith.constant 0 : index
    %c0_10 = arith.constant 0 : index
    %c0_11 = arith.constant 0 : index
    %14 = vector.load %arg2[%c0_9, %c0_10, %c0_11] : memref<8x32x1xf32, #tpu.memory_space<vmem>>, vector<8x32x1xf32>
    %15 = vector.broadcast %14 : vector<8x32x1xf32> to vector<8x32x16xf32>
    %16 = arith.addf %13, %15 : vector<8x32x16xf32>
    %17 = vector.extract_strided_slice %12 {offsets = [0, 0, 0], sizes = [1, 32, 1], strides = [1, 1, 1]} : vector<3x32x1xf32> to vector<1x32x1xf32>
    %18 = vector.shape_cast %6 : vector<8x16xf32> to vector<8x1x16xf32>
    %19 = vector.broadcast %17 : vector<1x32x1xf32> to vector<8x32x16xf32>
    %20 = vector.broadcast %18 : vector<8x1x16xf32> to vector<8x32x16xf32>
    %21 = arith.mulf %19, %20 : vector<8x32x16xf32>
    %22 = arith.addf %16, %21 : vector<8x32x16xf32>
    %23 = vector.extract_strided_slice %12 {offsets = [1, 0, 0], sizes = [1, 32, 1], strides = [1, 1, 1]} : vector<3x32x1xf32> to vector<1x32x1xf32>
    %24 = vector.shape_cast %0 : vector<8x16xf32> to vector<8x1x16xf32>
    %25 = vector.broadcast %23 : vector<1x32x1xf32> to vector<8x32x16xf32>
    %26 = vector.broadcast %24 : vector<8x1x16xf32> to vector<8x32x16xf32>
    %27 = arith.mulf %25, %26 : vector<8x32x16xf32>
    %28 = arith.addf %22, %27 : vector<8x32x16xf32>
    %29 = vector.extract_strided_slice %12 {offsets = [2, 0, 0], sizes = [1, 32, 1], strides = [1, 1, 1]} : vector<3x32x1xf32> to vector<1x32x1xf32>
    %30 = vector.shape_cast %11 : vector<8x16xf32> to vector<8x1x16xf32>
    %31 = vector.broadcast %29 : vector<1x32x1xf32> to vector<8x32x16xf32>
    %32 = vector.broadcast %30 : vector<8x1x16xf32> to vector<8x32x16xf32>
    %33 = arith.mulf %31, %32 : vector<8x32x16xf32>
    %34 = arith.addf %28, %33 : vector<8x32x16xf32>
    %35 = math.tanh %34 : vector<8x32x16xf32>
    %c0_12 = arith.constant 0 : index
    %c0_13 = arith.constant 0 : index
    %c0_14 = arith.constant 0 : index
    %36 = vector.load %arg7[%c0_12, %c0_13, %c0_14] : memref<1x32x1xf32, #tpu.memory_space<vmem>>, vector<1x32x1xf32>
    %37 = vector.broadcast %36 : vector<1x32x1xf32> to vector<8x32x16xf32>
    %38 = arith.mulf %35, %37 : vector<8x32x16xf32>
    %cst_15 = arith.constant dense<0.000000e+00> : vector<8x16xf32>
    %39 = vector.multi_reduction <add>, %38, %cst_15 [1] : vector<8x32x16xf32> to vector<8x16xf32>
    %c0_16 = arith.constant 0 : index
    %c0_17 = arith.constant 0 : index
    %40 = vector.load %arg1[%c0_16, %c0_17] : memref<8x1xi32, #tpu.memory_space<vmem>>, vector<8x1xi32>
    %41 = vector.broadcast %40 : vector<8x1xi32> to vector<8x16xi32>
    %42 = arith.cmpi sge, %1, %41 : vector<8x16xi32>
    %cst_18 = arith.constant -1.000000e+30 : f32
    %43 = vector.broadcast %cst_18 : f32 to vector<8x16xf32>
    %44 = arith.select %42, %43, %39 : vector<8x16xi1>, vector<8x16xf32>
    %cst_19 = arith.constant dense<0xFF800000> : vector<8xf32>
    %45 = vector.multi_reduction <maximumf>, %44, %cst_19 [1] : vector<8x16xf32> to vector<8xf32>
    %46 = vector.shape_cast %45 : vector<8xf32> to vector<8x1xf32>
    %47 = vector.broadcast %46 : vector<8x1xf32> to vector<8x16xf32>
    %48 = arith.subf %44, %47 : vector<8x16xf32>
    %49 = math.exp %48 : vector<8x16xf32>
    %cst_20 = arith.constant dense<0.000000e+00> : vector<8xf32>
    %50 = vector.multi_reduction <add>, %49, %cst_20 [1] : vector<8x16xf32> to vector<8xf32>
    %51 = vector.shape_cast %50 : vector<8xf32> to vector<8x1xf32>
    %52 = tpu.reciprocal %51 : vector<8x1xf32> -> vector<8x1xf32>
    %53 = vector.broadcast %52 : vector<8x1xf32> to vector<8x16xf32>
    %54 = arith.mulf %49, %53 : vector<8x16xf32>
    %c0_21 = arith.constant 0 : index
    %c0_22 = arith.constant 0 : index
    %55 = vector.load %arg9[%c0_21, %c0_22] : memref<8x16xf32, #tpu.memory_space<vmem>>, vector<8x16xf32>
    tpu.vector_store %arg9[%c0_21, %c0_22], %54 {strides = array<i32>} : memref<8x16xf32, #tpu.memory_space<vmem>>, vector<8x16xf32>,
    %56 = vector.shape_cast %54 : vector<8x16xf32> to vector<8x1x16xf32>
    %c0_23 = arith.constant 0 : index
    %c0_24 = arith.constant 0 : index
    %c0_25 = arith.constant 0 : index
    %57 = vector.load %arg5[%c0_23, %c0_24, %c0_25] : memref<8x16x16xf32, #tpu.memory_space<vmem>>, vector<8x16x16xf32>
    "tpu.trace_start"() <{level = 10 : i32, message = "bqt,btd->bqd"}> : () -> ()
    %cst_26 = arith.constant dense<0.000000e+00> : vector<8x1x16xf32>
    %58 = tpu.matmul %56, %57, %cst_26 {dimension_numbers = #tpu.dot_dimension_numbers<[2], [1], [1], [2], [0, 0, 0, 1, 1, 2], [0], [0]>} : vector<8x1x16xf32>, vector<8x16x16xf32>, vector<8x1x16xf32> -> vector<8x1x16xf32>
    "tpu.trace_stop"() : () -> ()
    %c0_27 = arith.constant 0 : index
    %c0_28 = arith.constant 0 : index
    %c0_29 = arith.constant 0 : index
    %59 = vector.load %arg8[%c0_27, %c0_28, %c0_29] : memref<8x1x16xf32, #tpu.memory_space<vmem>>, vector<8x1x16xf32>
    tpu.vector_store %arg8[%c0_27, %c0_28, %c0_29], %58 {strides = array<i32>} : memref<8x1x16xf32, #tpu.memory_space<vmem>>, vector<8x1x16xf32>,
    return
  }
  func.func @transform_0(%arg0: i32) -> (i32, i32) {
    %c0_i32 = arith.constant 0 : i32
    %c0_i32_0 = arith.constant 0 : i32
    return %arg0, %c0_i32 : i32, i32
  }
  func.func @transform_1(%arg0: i32) -> (i32, i32, i32) {
    %c0_i32 = arith.constant 0 : i32
    %c0_i32_0 = arith.constant 0 : i32
    %c0_i32_1 = arith.constant 0 : i32
    return %arg0, %c0_i32, %c0_i32_0 : i32, i32, i32
  }
  func.func @transform_2(%arg0: i32) -> (i32, i32, i32) {
    %c0_i32 = arith.constant 0 : i32
    %c0_i32_0 = arith.constant 0 : i32
    %c0_i32_1 = arith.constant 0 : i32
    return %arg0, %c0_i32, %c0_i32_0 : i32, i32, i32
  }
  func.func @transform_3(%arg0: i32) -> (i32, i32) {
    %c0_i32 = arith.constant 0 : i32
    %c0_i32_0 = arith.constant 0 : i32
    return %arg0, %c0_i32 : i32, i32
  }
  func.func @transform_4(%arg0: i32) -> (i32, i32, i32) {
    %c0_i32 = arith.constant 0 : i32
    %c0_i32_0 = arith.constant 0 : i32
    %c0_i32_1 = arith.constant 0 : i32
    return %arg0, %c0_i32, %c0_i32_0 : i32, i32, i32
  }
  func.func @transform_5(%arg0: i32) -> (i32, i32, i32) {
    %c0_i32 = arith.constant 0 : i32
    %c0_i32_0 = arith.constant 0 : i32
    %c0_i32_1 = arith.constant 0 : i32
    %c0_i32_2 = arith.constant 0 : i32
    return %c0_i32, %c0_i32_0, %c0_i32_1 : i32, i32, i32
  }
  func.func @transform_6(%arg0: i32) -> (i32, i32, i32) {
    %c0_i32 = arith.constant 0 : i32
    %c0_i32_0 = arith.constant 0 : i32
    %c0_i32_1 = arith.constant 0 : i32
    %c0_i32_2 = arith.constant 0 : i32
    return %c0_i32, %c0_i32_0, %c0_i32_1 : i32, i32, i32
  }
  func.func @transform_7(%arg0: i32) -> (i32, i32, i32) {
    %c0_i32 = arith.constant 0 : i32
    %c0_i32_0 = arith.constant 0 : i32
    %c0_i32_1 = arith.constant 0 : i32
    return %arg0, %c0_i32, %c0_i32_0 : i32, i32, i32
  }
  func.func @transform_8(%arg0: i32) -> (i32, i32) {
    %c0_i32 = arith.constant 0 : i32
    %c0_i32_0 = arith.constant 0 : i32
    return %arg0, %c0_i32 : i32, i32
  }
}

</mosaic_0001>

<bundles_post_ra>
// kernel: tpu_custom_call.1
= control target key start
LH: loop header
LB: loop body
LE: loop exit
PB: predicated region body
PF: predicated region fallthrough
CT: control target
= control target key end

     0   :  { %14 = vsyncpa [#allocation3], 0  ;;  %s1969_s9 = smov 16   ;;  %v1970_v2 = vmov 0   ;;  %s3095_s0 = inlined_call_operand.vmem [shape: s32[8,1], index: 0, kind: input, shape index: {}]   ;;  %s3096_s1 = inlined_call_operand.vmem [shape: f32[8,32,1], index: 1, kind: input, shape index: {}]   ;;  %s3097_s2 = inlined_call_operand.vmem [shape: f32[8,32,16], index: 2, kind: input, shape index: {}]   ;;  %s3098_s3 = inlined_call_operand.vmem [shape: f32[8,16], index: 3, kind: input, shape index: {}]   ;;  %s3099_s4 = inlined_call_operand.vmem [shape: f32[8,16,16], index: 4, kind: input, shape index: {}]   ;;  %s3100_s5 = inlined_call_operand.vmem [shape: f32[3,32,1], index: 5, kind: input, shape index: {}]   ;;  %s3101_s6 = inlined_call_operand.vmem [shape: f32[1,32,1], index: 6, kind: input, shape index: {}]   ;;  %s3102_s7 = inlined_call_operand.hbm [shape: f32[8,1,16], index: 7, kind: output, shape index: {0}]   ;;  %s3103_s8 = inlined_call_operand.hbm [shape: f32[8,16], index: 8, kind: output, shape index: {1}]  }
   0x1   :  { %v2027_v0 = vld [vmem:[%s3098_s3] sm:$0xff]  ;;  %v96_v1 = vld [vmem:[%s3096_s1 + $0x8] sm:$0xff]  ;;  %1855 = vset.pattern.permute.xlu1 %v1970_v2  ;;  %1854 = vset.pattern.permute.xlu0 %v1970_v2 }
   0x2   :  { %35 = vrot.lane.b32.xlu0 %v2027_v0, %s1969_s9  ;;  %134 = vperm.xlu1 %1855, %v96_v1   ;;  %v95_v3 = vld [vmem:[%s3096_s1] sm:$0xff]  ;;  %v100_v5 = vld [vmem:[%s3096_s1 + $0x28] sm:$0xff] }
   0x3   :  { %v99_v4 = vld [vmem:[%s3096_s1 + $0x20] sm:$0xff] }
   0x4   :  { %v51_v6 = vld [vmem:[%s3100_s5] sm:$0xff] }
   0x6   :  { %129 = vperm.xlu0 %1854, %v95_v3   ;;  %149 = vperm.xlu1 %1855, %v99_v4  }
   0x7   :  { %15 = vsyncpa [#allocation5], 0  ;;  %v52_v7 = vld [vmem:[%s3100_s5 + $0x8] sm:$0xff]  ;;  %v103_v8 = vld [vmem:[%s3096_s1 + $0x40] sm:$0xff]  ;;  %vm34_vm0 = vcmask 1047680   ;;  %s1972_s27 = smov 127  }
   0x8   :  { %v97_v9 = vld [vmem:[%s3096_s1 + $0x10] sm:$0xff]  ;;  %v107_v10 = vld [vmem:[%s3096_s1 + $0x60] sm:$0xff]  ;;  %v56_v12 = vld [vmem:[%s3100_s5 + $0x28] sm:$0xff]  ;;  %vm929_vm3 = vcmask 130048   ;;  %vm1047_vm4 = vcmask 1041409   ;;  %vm1049_vm5 = vcmask 1042434  }
   0x9   :  { %v53_v11 = vld [vmem:[%s3100_s5 + $0x10] sm:$0xff]  ;;  %v111_v13 = vld [vmem:[%s3096_s1 + $0x80] sm:$0xff]  ;;  %v98_v14 = vld [vmem:[%s3096_s1 + $0x18] sm:$0xff]  ;;  %vm1051_vm6 = vcmask 1043459   ;;  %vm1053_vm7 = vcmask 1044484   ;;  %vm1055_vm8 = vcmask 1045509  }
   0xa   :  { %154 = vperm.xlu0 %1854, %v100_v5   ;;  %371 = vperm.xlu1 %1855, %v51_v6   ;;  %v109_v15 = vld [vmem:[%s3096_s1 + $0x70] sm:$0xff]  ;;  %v116_v16 = vld [vmem:[%s3096_s1 + $0xa8] sm:$0xff]  ;;  %v55_v29 = vld [vmem:[%s3100_s5 + $0x20] sm:$0xff]  ;;  %vm1057_vm9 = vcmask 1046534   ;;  %vm1059_vm10 = vcmask 1047559   ;;  %vm1975_vm12 = vmmov 0  }
   0xb   :  { %v57_v17 = vld [vmem:[%s3100_s5 + $0x30] sm:$0xff]  ;;  %v60_v18 = vld [vmem:[%s3100_s5 + $0x48] sm:$0xff]  ;;  %v102_v32 = vld [vmem:[%s3096_s1 + $0x38] sm:$0xff]  ;;  %s1976_s30 = smov [#allocation4]  }
   0xc   :  { %v113_v19 = vld [vmem:[%s3096_s1 + $0x90] sm:$0xff]  ;;  %v120_v20 = vld [vmem:[%s3096_s1 + $0xc8] sm:$0xff]  ;;  %v115_v33 = vld [vmem:[%s3096_s1 + $0xa0] sm:$0xff]  ;;  %s1744_s10 = sshll.u32 %s1976_s30, 4  ;;  %s1745_s10 = int_to_ptr.vmem [resolvable:$true] %s1744_s10 }
   0xd   :  { %v117_v21 = vld [vmem:[%s3096_s1 + $0xb0] sm:$0xff]  ;;  %v124_v22 = vld [vmem:[%s3096_s1 + $0xe8] sm:$0xff]  ;;  %v54_v34 = vld [vmem:[%s3100_s5 + $0x18] sm:$0xff]  ;;  %s1925_s11 = scalar_lea.vmem %s1745_s10, 128  ;;  %p1930_p1 = scmp.lt.s32.totalorder %s1745_s10, %s1745_s10 }
   0xe   :  { %376 = vperm.xlu0 %1854, %v52_v7   ;;  %169 = vperm.xlu1 %1855, %v103_v8   ;;  %v61_v23 = vld [vmem:[%s3100_s5 + $0x50] sm:$0xff]  ;;  %v104_v26 = vld [vmem:[%s3096_s1 + $0x48] sm:$0xff]  ;;  %v59_v35 = vld [vmem:[%s3100_s5 + $0x40] sm:$0xff]  ;;  %p1926_p0 = scmp.ne.s32.totalorder %s1745_s10, %s1925_s11  ;;  %p1931_p2 = scmp.lt.s32.totalorder %s1925_s11, %s1925_s11 }
   0xf   :  { %v101_v27 = vld [vmem:[%s3096_s1 + $0x30] sm:$0xff]  ;;  %v108_v28 = vld [vmem:[%s3096_s1 + $0x68] sm:$0xff]  ;;  %v106_v36 = vld [vmem:[%s3096_s1 + $0x58] sm:$0xff] }
  0x10   :  { %v105_v30 = vld [vmem:[%s3096_s1 + $0x50] sm:$0xff]  ;;  %v112_v31 = vld [vmem:[%s3096_s1 + $0x88] sm:$0xff]  ;;  %v119_v37 = vld [vmem:[%s3096_s1 + $0xc0] sm:$0xff]  ;;  %p1932_p3 = por %p1931_p2, %p1930_p1 }
  0x11   :  { %v110_v38 = vld [vmem:[%s3096_s1 + $0x78] sm:$0xff]  ;;  %v123_v39 = vld [vmem:[%s3096_s1 + $0xe0] sm:$0xff]  ;;  %v874_v45 = vld [vmem:[%s3101_s6 + $0x8] sm:$0xff] }
  0x12   :  { %139 = vperm.xlu1 %1855, %v97_v9   ;;  %v58_v40 = vld [vmem:[%s3100_s5 + $0x38] sm:$0xff]  ;;  %v121_v53 = vld [vmem:[%s3096_s1 + $0xd0] sm:$0xff]  ;;  %v873_v58 = vld [vmem:[%s3101_s6] sm:$0xff]  ;;  %p1933_p4 = pnand %p1932_p3, %p1926_p0 }
  0x13   :  { %v114_v41 = vld [vmem:[%s3096_s1 + $0x98] sm:$0xff]  ;;  %v125_v55 = vld [vmem:[%s3096_s1 + $0xf0] sm:$0xff]  ;;  %v1034_v63 = vld [vmem:[%s3095_s0] sm:$0xff] }
  0x14   :  { %v118_v42 = vld [vmem:[%s3096_s1 + $0xb8] sm:$0xff]  ;;  %v875_v61 = vld [vmem:[%s3101_s6 + $0x10] sm:$0xff] }
  0x15   :  { %v62_v43 = vld [vmem:[%s3100_s5 + $0x58] sm:$0xff]  ;;  %s1971_s5 = smov 113  }
  0x16   :  { %189 = vperm.xlu1 %1855, %v107_v10   ;;  %v126_v44 = vld [vmem:[%s3096_s1 + $0xf8] sm:$0xff] }
  0x17   :  { %v876_v46 = vld [vmem:[%s3101_s6 + $0x18] sm:$0xff] }
  0x18   :  { %v122_v56 = vld [vmem:[%s3096_s1 + $0xd8] sm:$0xff] }
  0x1a   :  { %381 = vperm.xlu1 %1855, %v53_v11  }
  0x1e   :  { %550 = vperm.xlu1 %1855, %v56_v12  }
  0x22   :  { %209 = vperm.xlu1 %1855, %v111_v13  }
  0x26   :  { %144 = vperm.xlu1 %1855, %v98_v14  }
  0x2a   :  { %199 = vperm.xlu1 %1855, %v109_v15  }
  0x2e   :  { %234 = vperm.xlu1 %1855, %v116_v16  }
  0x32   :  { %555 = vperm.xlu1 %1855, %v57_v17  }
  0x36   :  { %724 = vperm.xlu1 %1855, %v60_v18  }
  0x3a   :  { %219 = vperm.xlu1 %1855, %v113_v19   ;;  %v31_v19 = vlaneseq }
  0x3e   :  { %254 = vperm.xlu1 %1855, %v120_v20   ;;  %v1973_v20 = vmov 1966171168  }
  0x42   :  { %239 = vperm.xlu1 %1855, %v117_v21   ;;  %v322_v21 = vunpack.c.l.s4 %v1973_v20 }
  0x46   :  { %274 = vperm.xlu1 %1855, %v124_v22  }
  0x4a   :  { %729 = vperm.xlu1 %1855, %v61_v23   ;;  %v323_v23 = vunpack.c.0.s8 %v322_v21 }
  0x74   :  { %v36_v24 = vpop.permute.xlu0 %35 }
  0x75   :  { %v37_v25 = vsel %vm34_vm0, %v36_v24, %v2027_v0  ;;  %v325_v24 = vshrl.u32 %v31_v19, 7 }
  0x76   :  { %38 = vrot.lane.b32.xlu0 %v37_v25, %s1969_s9 }
  0x7a   :  { %174 = vperm.xlu0 %1854, %v104_v26  }
  0x7d   :  { %v2171_v52 = vpop.permute.xlu1 %134 }
  0x7e   :  { %159 = vperm.xlu0 %1854, %v101_v27   ;;  %v2243_v27 = vsub.s32 %v323_v23, %v325_v24 }
  0x80   :  { %3124 = vst [vmem:[#allocation12_spill] sm:$0xff] %v2243_v27 }
  0x81   :  { %v2163_v47 = vpop.permute.xlu0 %129  ;;  %v2176_v54 = vpop.permute.xlu1 %149 }
  0x82   :  { %194 = vperm.xlu0 %1854, %v108_v28  }
  0x85   :  { %v2165_v48 = vpop.permute.xlu0 %154  ;;  %v2184_v57 = vpop.permute.xlu1 %371 }
  0x86   :  { %545 = vperm.xlu0 %1854, %v55_v29   ;;  %v501_v29 = vrot.slane %v2027_v0, %v2243_v27 }
  0x89   :  { %v2167_v49 = vpop.permute.xlu0 %376  ;;  %v2191_v60 = vpop.permute.xlu1 %169 }
  0x8a   :  { %179 = vperm.xlu0 %1854, %v105_v30  }
  0x8d   :  { %v2201_v1 = vpop.permute.xlu1 %139 }
  0x8e   :  { %214 = vperm.xlu0 %1854, %v112_v31   ;;  %v494_v31 = vcombine.high %v2027_v0, %v2027_v0 }
  0x91   :  { %v2205_v3 = vpop.permute.xlu1 %189 }
  0x92   :  { %164 = vperm.xlu0 %1854, %v102_v32   ;;  %v509_v32 = vcombine.high %v501_v29, %v501_v29 }
  0x95   :  { %v2209_v5 = vpop.permute.xlu1 %381 }
  0x96   :  { %229 = vperm.xlu0 %1854, %v115_v33   ;;  %3120 = vst [vmem:[#allocation8_spill] sm:$0xff] %v2209_v5 }
  0x99   :  { %v2213_v7 = vpop.permute.xlu1 %550 }
  0x9a   :  { %386 = vperm.xlu0 %1854, %v54_v34   ;;  %v508_v34 = vrot.slane %v494_v31, %v2243_v27 }
  0x9d   :  { %v2217_v9 = vpop.permute.xlu1 %209 }
  0x9e   :  { %719 = vperm.xlu0 %1854, %v59_v35  }
  0xa1   :  { %v2221_v11 = vpop.permute.xlu1 %144 }
  0xa2   :  { %184 = vperm.xlu0 %1854, %v106_v36   ;;  %v517_v36 = vrot.slane %v501_v29, %v2243_v27  ;;  %v2309_v29 = vand.u32 127, %v31_v19 }
  0xa4   :  { %3126 = vst [vmem:[#allocation14_spill] sm:$0xff] %v2309_v29  ;;  %vm33_vm1 = vcmp.eq.s32.totalorder %v2309_v29, 0  ;;  %vm46_vm2 = vcmp.eq.s32.totalorder %v2309_v29, 15 }
  0xa5   :  { %v2225_v13 = vpop.permute.xlu1 %199 }
  0xa6   :  { %249 = vperm.xlu0 %1854, %v119_v37   ;;  %v531_v37 = vrot.slane %v509_v32, %v2243_v27 }
  0xa9   :  { %v2229_v15 = vpop.permute.xlu1 %234 }
  0xaa   :  { %204 = vperm.xlu0 %1854, %v110_v38   ;;  %v510_v38 = vcombine.high %v508_v34, %v508_v34 }
  0xad   :  { %v2233_v17 = vpop.permute.xlu1 %555 }
  0xae   :  { %269 = vperm.xlu0 %1854, %v123_v39  }
  0xb1   :  { %v2237_v22 = vpop.permute.xlu1 %724 }
  0xb2   :  { %560 = vperm.xlu0 %1854, %v58_v40   ;;  %3123 = vst [vmem:[#allocation11_spill] sm:$0xff] %v2237_v22  ;;  %v2262_v40 = vsub.s32 0, %v325_v24 }
  0xb4   :  { %3125 = vst [vmem:[#allocation13_spill] sm:$0xff] %v2262_v40 }
  0xb5   :  { %v2241_v26 = vpop.permute.xlu1 %219 }
  0xb6   :  { %224 = vperm.xlu0 %1854, %v114_v41   ;;  %v539_v41 = vcombine.high %v517_v36, %v517_v36 }
  0xb8   :  { %v2299_v20 = vrot.slane %v539_v41, %v2262_v40 }
  0xb9   :  { %v2249_v30 = vpop.permute.xlu1 %254 }
  0xba   :  { %244 = vperm.xlu0 %1854, %v118_v42   ;;  %v541_v42 = vcombine.high %v531_v37, %v531_v37 }
  0xbc   :  { %v2302_v21 = vrot.slane %v541_v42, %v2262_v40 }
  0xbd   :  { %v2256_v35 = vpop.permute.xlu1 %239 }
  0xbe   :  { %734 = vperm.xlu0 %1854, %v62_v43   ;;  %v2356_v41 = vmul.f32 %v2302_v21, %v2213_v7 }
  0xc0   :  { %3130 = vst [vmem:[#allocation18_spill] sm:$0xff] %v2356_v41 }
  0xc1   :  { %v2264_v43 = vpop.permute.xlu1 %274 }
  0xc2   :  { %284 = vperm.xlu0 %1854, %v126_v44   ;;  %v64_v44 = vld [vmem:[%s3097_s2 + $0x8] sm:$0xff] }
  0xc3   :  { %v2312_v31 = vadd.f32 %v2171_v52, %v64_v44 }
  0xc6   :  { %884 = vperm.xlu0 %1854, %v874_v45   ;;  %v538_v45 = vrot.slane %v510_v38, %v2243_v27 }
  0xc8   :  { %v2305_v23 = vrot.slane %v538_v45, %v2262_v40 }
  0xca   :  { %894 = vperm.xlu0 %1854, %v876_v46   ;;  %v67_v46 = vld [vmem:[%s3097_s2 + $0x20] sm:$0xff]  ;;  %v2415_v22 = vmul.f32 %v2305_v23, %v2233_v17 }
  0xcb   :  { %v2315_v32 = vadd.f32 %v2176_v54, %v67_v46  ;;  %v77_v54 = vld [vmem:[%s3097_s2 + $0x70] sm:$0xff]  ;;  %v2364_v46 = vmul.f32 %v2305_v23, %v2213_v7 }
  0xcc   :  { %3138 = vst [vmem:[#allocation26_spill] sm:$0xff] %v2415_v22 }
  0xcd   :  { %3132 = vst [vmem:[#allocation20_spill] sm:$0xff] %v2364_v46 }
  0xe8   :  { %v39_v50 = vpop.permute.xlu0 %38 }
  0xe9   :  { %v40_v51 = vsel %vm34_vm0, %v39_v50, %v2027_v0  ;;  %v524_v0 = vrot.slane %v508_v34, %v2243_v27  ;;  %v63_v50 = vld [vmem:[%s3097_s2] sm:$0xff] }
  0xea   :  { %42 = vrot.lane.b32.xlu1 %v40_v51, %s1971_s5  ;;  %v2318_v34 = vadd.f32 %v2163_v47, %v63_v50 }
  0xeb   :  { %v540_v44 = vcombine.high %v524_v0, %v524_v0 }
  0xee   :  { %47 = vrot.lane.b32.xlu1 %v40_v51, %s1972_s27  ;;  %v68_v51 = vld [vmem:[%s3097_s2 + $0x28] sm:$0xff] }
  0xf2   :  { %259 = vperm.xlu1 %1855, %v121_v53   ;;  %v2281_v53 = vrot.slane %v517_v36, %v2262_v40  ;;  %v2321_v36 = vadd.f32 %v2165_v48, %v68_v51  ;;  %v66_v48 = vld [vmem:[%s3097_s2 + $0x18] sm:$0xff]  ;;  %v542_v51 = vcombine.high %v538_v45, %v538_v45 }
  0xf4   :  { %v2421_v46 = vmul.f32 %v2281_v53, %v2233_v17 }
  0xf5   :  { %v2189_v59 = vpop.permute.xlu0 %174 }
  0xf6   :  { %279 = vperm.xlu1 %1855, %v125_v55   ;;  %v2284_v55 = vrot.slane %v531_v37, %v2262_v40  ;;  %v79_v37 = vld [vmem:[%s3097_s2 + $0x80] sm:$0xff]  ;;  %3139 = vst [vmem:[#allocation27_spill] sm:$0xff] %v2421_v46 }
  0xf7   :  { %v2367_v50 = vadd.f32 %v2217_v9, %v79_v37  ;;  %v2384_v9 = vmul.f32 %v2281_v53, %v2213_v7  ;;  %v88_v37 = vld [vmem:[%s3097_s2 + $0xc8] sm:$0xff] }
  0xf8   :  { %v2337_v47 = vmul.f32 %v2284_v55, %v2213_v7  ;;  %v2388_v45 = vmul.f32 %v2284_v55, %v2233_v17 }
  0xf9   :  { %v2196_v62 = vpop.permute.xlu0 %159  ;;  %3133 = vst [vmem:[#allocation21_spill] sm:$0xff] %v2384_v9 }
  0xfa   :  { %264 = vperm.xlu1 %1855, %v122_v56   ;;  %v2287_v56 = vrot.slane %v524_v0, %v2262_v40  ;;  %3127 = vst [vmem:[#allocation15_spill] sm:$0xff] %v2337_v47  ;;  %v81_v0 = vld [vmem:[%s3097_s2 + $0x90] sm:$0xff]  ;;  %3134 = vst [vmem:[#allocation22_spill] sm:$0xff] %v2388_v45 }
  0xfb   :  { %v2433_v22 = vadd.f32 %v2241_v26, %v81_v0 }
  0xfc   :  { %v2360_v42 = vmul.f32 %v2287_v56, %v2213_v7 }
  0xfd   :  { %v2203_v2 = vpop.permute.xlu0 %194 }
  0xfe   :  { %879 = vperm.xlu1 %1855, %v873_v58   ;;  %v71_v58 = vld [vmem:[%s3097_s2 + $0x40] sm:$0xff]  ;;  %3131 = vst [vmem:[#allocation19_spill] sm:$0xff] %v2360_v42  ;;  %v72_v42 = vld [vmem:[%s3097_s2 + $0x48] sm:$0xff] }
  0xff   :  { %v2327_v38 = vadd.f32 %v2191_v60, %v71_v58  ;;  %v84_v60 = vld [vmem:[%s3097_s2 + $0xa8] sm:$0xff]  ;;  %v2371_v58 = vadd.f32 %v2221_v11, %v66_v48  ;;  %v2392_v11 = vmul.f32 %v2299_v20, %v2233_v17  ;;  %v85_v48 = vld [vmem:[%s3097_s2 + $0xb0] sm:$0xff] }
 0x100   :  { %v2444_v45 = vadd.f32 %v2256_v35, %v85_v48  ;;  %v2465_v35 = vadd.f32 %v2189_v59, %v72_v42  ;;  %v83_v42 = vld [vmem:[%s3097_s2 + $0xa0] sm:$0xff] }
 0x101   :  { %v2207_v4 = vpop.permute.xlu0 %545  ;;  %3135 = vst [vmem:[#allocation23_spill] sm:$0xff] %v2392_v11  ;;  %v594_v11 = vrot.slane %v542_v51, %v2262_v40 }
 0x102   :  { %889 = vperm.xlu1 %1855, %v875_v61   ;;  %v65_v61 = vld [vmem:[%s3097_s2 + $0x10] sm:$0xff]  ;;  %v2483_v59 = vmul.f32 %v2299_v20, %v2207_v4 }
 0x103   :  { %v2330_v19 = vadd.f32 %v2201_v1, %v65_v61  ;;  %v2348_v1 = vpop.permute.xlu1 %729  ;;  %v2374_v61 = vadd.f32 %v2225_v13, %v77_v54  ;;  %v2396_v13 = vmul.f32 %v2302_v21, %v2233_v17  ;;  %v92_v54 = vld [vmem:[%s3097_s2 + $0xe8] sm:$0xff]  ;;  %v2459_v0 = vmul.f32 %v594_v11, %v2213_v7 }
 0x104   :  { %3128 = vst [vmem:[#allocation16_spill] sm:$0xff] %v2348_v1  ;;  %v2447_v47 = vadd.f32 %v2264_v43, %v92_v54  ;;  %3147 = vst [vmem:[#allocation35_spill] sm:$0xff] %v2483_v59  ;;  %v2502_v54 = vmul.f32 %v2287_v56, %v2207_v4 }
 0x105   :  { %v2211_v6 = vpop.permute.xlu0 %179  ;;  %3136 = vst [vmem:[#allocation24_spill] sm:$0xff] %v2396_v13  ;;  %v69_v13 = vld [vmem:[%s3097_s2 + $0x30] sm:$0xff]  ;;  %3144 = vst [vmem:[#allocation32_spill] sm:$0xff] %v2459_v0  ;;  %v87_v0 = vld [vmem:[%s3097_s2 + $0xc0] sm:$0xff] }
 0x106   :  { %1036 = vperm.xlu1 %1855, %v1034_v63   ;;  %v75_v63 = vld [vmem:[%s3097_s2 + $0x60] sm:$0xff]  ;;  %3141 = vst [vmem:[#allocation29_spill] sm:$0xff] %v2447_v47  ;;  %v2468_v43 = vadd.f32 %v2196_v62, %v69_v13  ;;  %v2487_v62 = vmul.f32 %v2302_v21, %v2207_v4  ;;  %3150 = vst [vmem:[#allocation38_spill] sm:$0xff] %v2502_v54 }
 0x107   :  { %v2333_v52 = vadd.f32 %v2205_v3, %v75_v63  ;;  %v2352_v3 = vmul.f32 %v2299_v20, %v2213_v7  ;;  %v2377_v63 = vadd.f32 %v2229_v15, %v84_v60  ;;  %v2400_v15 = vmul.f32 %v2287_v56, %v2233_v17 }
 0x108   :  { %3148 = vst [vmem:[#allocation36_spill] sm:$0xff] %v2487_v62 }
 0x109   :  { %v2215_v8 = vpop.permute.xlu0 %214  ;;  %3129 = vst [vmem:[#allocation17_spill] sm:$0xff] %v2352_v3  ;;  %3137 = vst [vmem:[#allocation25_spill] sm:$0xff] %v2400_v15  ;;  %v2424_v15 = vrot.slane %v540_v44, %v2262_v40  ;;  %v76_v44 = vld [vmem:[%s3097_s2 + $0x68] sm:$0xff]  ;;  %v2441_v3 = vadd.f32 %v2249_v30, %v88_v37  ;;  %v2462_v30 = vmul.f32 %v594_v11, %v2233_v17 }
 0x10a   :  { %v2475_v48 = vadd.f32 %v2203_v2, %v76_v44  ;;  %v70_v2 = vld [vmem:[%s3097_s2 + $0x38] sm:$0xff]  ;;  %v2506_v44 = vmul.f32 %v2305_v23, %v2207_v4 }
 0x10b   :  { %3140 = vst [vmem:[#allocation28_spill] sm:$0xff] %v2441_v3  ;;  %v2451_v26 = vmul.f32 %v2424_v15, %v2213_v7  ;;  %v2456_v51 = vmul.f32 %v2424_v15, %v2233_v17  ;;  %3145 = vst [vmem:[#allocation33_spill] sm:$0xff] %v2462_v30  ;;  %v2479_v7 = vmul.f32 %v2284_v55, %v2207_v4  ;;  %v80_v17 = vld [vmem:[%s3097_s2 + $0x88] sm:$0xff]  ;;  %v74_v30 = vld [vmem:[%s3097_s2 + $0x58] sm:$0xff] }
 0x10c   :  { %3151 = vst [vmem:[#allocation39_spill] sm:$0xff] %v2506_v44  ;;  %v91_v44 = vld [vmem:[%s3097_s2 + $0xe0] sm:$0xff]  ;;  %v2530_v59 = vmul.f32 %v2424_v15, %v2207_v4  ;;  %v2536_v46 = vadd.f32 %v2215_v8, %v80_v17 }
 0x10d   :  { %v2219_v10 = vpop.permute.xlu0 %164  ;;  %3142 = vst [vmem:[#allocation30_spill] sm:$0xff] %v2451_v26  ;;  %3143 = vst [vmem:[#allocation31_spill] sm:$0xff] %v2456_v51  ;;  %v78_v51 = vld [vmem:[%s3097_s2 + $0x78] sm:$0xff]  ;;  %v2519_v26 = vmul.f32 %v2281_v53, %v2207_v4 }
 0x10e   :  { %3146 = vst [vmem:[#allocation34_spill] sm:$0xff] %v2479_v7  ;;  %3153 = vst [vmem:[#allocation41_spill] sm:$0xff] %v2530_v59  ;;  %v2533_v7 = vmul.f32 %v594_v11, %v2207_v4  ;;  %v2539_v9 = vadd.f32 %v2219_v10, %v70_v2 }
 0x10f   :  { %3152 = vst [vmem:[#allocation40_spill] sm:$0xff] %v2519_v26 }
 0x110   :  { %3154 = vst [vmem:[#allocation42_spill] sm:$0xff] %v2533_v7 }
 0x111   :  { %v2223_v12 = vpop.permute.xlu0 %229 }
 0x115   :  { %v2227_v14 = vpop.permute.xlu0 %386 }
 0x116   :  { %3121 = vst [vmem:[#allocation9_spill] sm:$0xff] %v2227_v14 }
 0x119   :  { %v2231_v16 = vpop.permute.xlu0 %719 }
 0x11a   :  { %3122 = vst [vmem:[#allocation10_spill] sm:$0xff] %v2231_v16 }
 0x11d   :  { %v2235_v18 = vpop.permute.xlu0 %184 }
 0x121   :  { %v2239_v25 = vpop.permute.xlu0 %249 }
 0x122   :  { %v2549_v26 = vadd.f32 %v2239_v25, %v87_v0 }
 0x124   :  { %3155 = vst [vmem:[#allocation43_spill] sm:$0xff] %v2549_v26 }
 0x125   :  { %v2245_v28 = vpop.permute.xlu0 %204 }
 0x126   :  { %v2552_v4 = vadd.f32 %v2245_v28, %v78_v51 }
 0x129   :  { %v2253_v33 = vpop.permute.xlu0 %269 }
 0x12a   :  { %v2556_v10 = vadd.f32 %v2253_v33, %v91_v44 }
 0x12c   :  { %3156 = vst [vmem:[#allocation44_spill] sm:$0xff] %v2556_v10 }
 0x12d   :  { %v2260_v39 = vpop.permute.xlu0 %560 }
 0x12e   :  { %v2569_v28 = vmul.f32 %v2302_v21, %v2260_v39  ;;  %v2577_v33 = vmul.f32 %v2305_v23, %v2260_v39  ;;  %v94_v21 = vld [vmem:[%s3097_s2 + $0xf8] sm:$0xff]  ;;  %v2603_v44 = vmul.f32 %v2424_v15, %v2260_v39 }
 0x130   :  { %3159 = vst [vmem:[#allocation47_spill] sm:$0xff] %v2569_v28  ;;  %3161 = vst [vmem:[#allocation49_spill] sm:$0xff] %v2577_v33 }
 0x131   :  { %v2307_v24 = vpop.permute.xlu0 %224  ;;  %3164 = vst [vmem:[#allocation52_spill] sm:$0xff] %v2603_v44 }
 0x135   :  { %v2411_v60 = vpop.permute.xlu0 %244 }
 0x139   :  { %v2498_v13 = vpop.permute.xlu0 %734 }
 0x13a   :  { %3149 = vst [vmem:[#allocation37_spill] sm:$0xff] %v2498_v13 }
 0x13d   :  { %v285_v51 = vpop.permute.xlu0 %284 }
 0x15c   :  { %v43_v1 = vpop.permute.xlu1 %42 }
 0x15d   :  { %v45_v16 = vsel %vm33_vm1, 0.0, %v43_v1 }
 0x15e   :  { %v320_v41 = vcombine.high %v45_v16, %v45_v16  ;;  %v327_v1 = vrot.slane %v45_v16, %v2243_v27 }
 0x160   :  { %v334_v16 = vrot.slane %v320_v41, %v2243_v27  ;;  %v73_v41 = vld [vmem:[%s3097_s2 + $0x50] sm:$0xff]  ;;  %v335_v37 = vcombine.high %v327_v1, %v327_v1  ;;  %v343_v62 = vrot.slane %v327_v1, %v2243_v27  ;;  %v2546_v1 = vadd.f32 %v2235_v18, %v74_v30  ;;  %v48_v17 = vpop.permute.xlu1 %47 }
 0x161   :  { %v2522_v54 = vadd.f32 %v2211_v6, %v73_v41  ;;  %v2542_v6 = vadd.f32 %v2223_v12, %v83_v42  ;;  %v2560_v12 = vmul.f32 %v2284_v55, %v2260_v39  ;;  %v2564_v18 = vmul.f32 %v2299_v20, %v2260_v39  ;;  %v82_v55 = vld [vmem:[%s3097_s2 + $0x98] sm:$0xff] }
 0x162   :  { %v336_v13 = vcombine.high %v334_v16, %v334_v16  ;;  %v357_v41 = vrot.slane %v335_v37, %v2243_v27  ;;  %v350_v8 = vrot.slane %v334_v16, %v2243_v27  ;;  %v2573_v16 = vmul.f32 %v2287_v56, %v2260_v39  ;;  %v86_v20 = vld [vmem:[%s3097_s2 + $0xb8] sm:$0xff] }
 0x163   :  { %3157 = vst [vmem:[#allocation45_spill] sm:$0xff] %v2560_v12  ;;  %3158 = vst [vmem:[#allocation46_spill] sm:$0xff] %v2564_v18  ;;  %v365_v0 = vcombine.high %v343_v62, %v343_v62  ;;  %v392_v30 = vrot.slane %v343_v62, %v2262_v40  ;;  %v2591_v23 = vsel %vm46_vm2, 0.0, %v48_v17  ;;  %v2595_v37 = vmul.f32 %v2281_v53, %v2260_v39 }
 0x164   :  { %v364_v25 = vrot.slane %v336_v13, %v2243_v27  ;;  %3160 = vst [vmem:[#allocation48_spill] sm:$0xff] %v2573_v16  ;;  %v367_v56 = vcombine.high %v357_v41, %v357_v41  ;;  %v366_v2 = vcombine.high %v350_v8, %v350_v8  ;;  %v396_v42 = vrot.slane %v357_v41, %v2262_v40 }
 0x165   :  { %3162 = vst [vmem:[#allocation50_spill] sm:$0xff] %v2595_v37  ;;  %v2599_v13 = vmul.f32 %v594_v11, %v2260_v39  ;;  %v306_v62 = vadd.f32 %v2307_v24, %v82_v55  ;;  %v2607_v29 = vadd.f32 %v2411_v60, %v86_v20  ;;  %v2609_v17 = vadd.f32 %v285_v51, %v94_v21 }
 0x166   :  { %v368_v7 = vcombine.high %v364_v25, %v364_v25  ;;  %v400_v53 = vrot.slane %v365_v0, %v2262_v40  ;;  %v408_v59 = vrot.slane %v350_v8, %v2262_v40  ;;  %v668_v11 = vcombine.high %v2591_v23, %v2591_v23 }
 0x167   :  { %3163 = vst [vmem:[#allocation51_spill] sm:$0xff] %v2599_v13  ;;  %3165 = vst [vmem:[#allocation53_spill] sm:$0xff] %v2607_v29  ;;  %v2617_v41 = vrot.slane %v2591_v23, %v2243_v27  ;;  %v404_v39 = vrot.slane %v367_v56, %v2262_v40  ;;  %v412_v24 = vrot.slane %v364_v25, %v2262_v40 }
 0x168   :  { %3166 = vst [vmem:[#allocation54_spill] sm:$0xff] %v2609_v17  ;;  %v429_v15 = vmul.f32 %v392_v30, %v2184_v57  ;;  %v430_v60 = vmul.f32 %v392_v30, %v2167_v49  ;;  %v2624_v55 = vrot.slane %v366_v2, %v2262_v40  ;;  %v431_v8 = vmul.f32 %v392_v30, %v2209_v5 }
 0x169   :  { %3167 = vst [vmem:[#allocation55_spill] sm:$0xff] %v2617_v41  ;;  %v432_v20 = vmul.f32 %v392_v30, %v2227_v14  ;;  %v433_v21 = vmul.f32 %v396_v42, %v2184_v57  ;;  %v2630_v51 = vrot.slane %v368_v7, %v2262_v40  ;;  %v434_v0 = vmul.f32 %v396_v42, %v2167_v49 }
 0x16a   :  { %3168 = vst [vmem:[#allocation56_spill] sm:$0xff] %v2624_v55  ;;  %v435_v25 = vmul.f32 %v396_v42, %v2209_v5  ;;  %v436_v56 = vmul.f32 %v396_v42, %v2227_v14  ;;  %v437_v23 = vmul.f32 %v400_v53, %v2184_v57  ;;  %v438_v2 = vmul.f32 %v400_v53, %v2167_v49 }
 0x16b   :  { %v439_v44 = vmul.f32 %v400_v53, %v2209_v5  ;;  %v440_v13 = vmul.f32 %v400_v53, %v2227_v14  ;;  %v441_v30 = vmul.f32 %v404_v39, %v2184_v57  ;;  %v442_v33 = vmul.f32 %v404_v39, %v2167_v49 }
 0x16c   :  { %v443_v7 = vmul.f32 %v404_v39, %v2209_v5  ;;  %v444_v40 = vmul.f32 %v404_v39, %v2227_v14  ;;  %v445_v16 = vmul.f32 %v408_v59, %v2184_v57  ;;  %v446_v42 = vmul.f32 %v408_v59, %v2167_v49 }
 0x16d   :  { %v447_v28 = vmul.f32 %v408_v59, %v2209_v5  ;;  %v448_v18 = vmul.f32 %v408_v59, %v2227_v14  ;;  %v449_v12 = vmul.f32 %v412_v24, %v2184_v57  ;;  %v450_v53 = vmul.f32 %v412_v24, %v2167_v49 }
 0x16e   :  { %v451_v37 = vmul.f32 %v412_v24, %v2209_v5  ;;  %v452_v41 = vmul.f32 %v412_v24, %v2227_v14  ;;  %v453_v17 = vmul.f32 %v2624_v55, %v2184_v57  ;;  %v454_v39 = vmul.f32 %v2624_v55, %v2167_v49 }
 0x16f   :  { %v457_v47 = vmul.f32 %v2630_v51, %v2184_v57  ;;  %v458_v59 = vmul.f32 %v2630_v51, %v2167_v49  ;;  %v460_v10 = vmul.f32 %v2630_v51, %v2227_v14  ;;  %v461_v27 = vadd.f32 %v429_v15, %v2318_v34 }
 0x170   :  { %v462_v5 = vadd.f32 %v430_v60, %v2312_v31  ;;  %v463_v24 = vadd.f32 %v431_v8, %v2330_v19  ;;  %v464_v3 = vadd.f32 %v432_v20, %v2371_v58  ;;  %v465_v26 = vadd.f32 %v433_v21, %v2315_v32  ;;  %v3182_v60 = vld [vmem:[#allocation34_spill] sm:$0xff] }
 0x171   :  { %v466_v55 = vadd.f32 %v434_v0, %v2321_v36  ;;  %v467_v57 = vadd.f32 %v435_v25, %v2468_v43  ;;  %v468_v29 = vadd.f32 %v436_v56, %v2539_v9  ;;  %v469_v49 = vadd.f32 %v437_v23, %v2327_v38  ;;  %v3184_v21 = vld [vmem:[#allocation22_spill] sm:$0xff]  ;;  %v260_v25 = vpop.permute.xlu1 %259  ;;  %v3185_v56 = vld [vmem:[#allocation45_spill] sm:$0xff]  ;;  %v3186_v23 = vld [vmem:[#allocation35_spill] sm:$0xff] }
 0x172   :  { %v470_v14 = vadd.f32 %v438_v2, %v2465_v35  ;;  %v471_v34 = vadd.f32 %v439_v44, %v2522_v54  ;;  %v472_v31 = vadd.f32 %v440_v13, %v2546_v1  ;;  %v473_v19 = vadd.f32 %v441_v30, %v2333_v52  ;;  %v3169_v52 = vld [vmem:[#allocation53_spill] sm:$0xff] }
 0x173   :  { %v474_v58 = vadd.f32 %v442_v33, %v2475_v48  ;;  %v475_v32 = vadd.f32 %v443_v7, %v2374_v61  ;;  %v476_v36 = vadd.f32 %v444_v40, %v2552_v4  ;;  %v477_v43 = vadd.f32 %v445_v16, %v2367_v50  ;;  %v3170_v48 = vld [vmem:[#allocation43_spill] sm:$0xff]  ;;  %v3171_v61 = vld [vmem:[#allocation28_spill] sm:$0xff]  ;;  %v3187_v30 = vld [vmem:[#allocation17_spill] sm:$0xff] }
 0x174   :  { %v478_v9 = vadd.f32 %v446_v42, %v2536_v46  ;;  %v479_v38 = vadd.f32 %v447_v28, %v2433_v22  ;;  %v480_v15 = vadd.f32 %v448_v18, %v306_v62  ;;  %v481_v35 = vadd.f32 %v449_v12, %v2542_v6  ;;  %v3172_v40 = vld [vmem:[#allocation12_spill] sm:$0xff]  ;;  %v3174_v46 = vld [vmem:[#allocation29_spill] sm:$0xff]  ;;  %v3175_v18 = vld [vmem:[#allocation54_spill] sm:$0xff] }
 0x175   :  { %v482_v54 = vadd.f32 %v450_v53, %v2377_v63  ;;  %v483_v1 = vadd.f32 %v451_v37, %v2444_v45  ;;  %v484_v13 = vadd.f32 %v452_v41, %v3169_v52  ;;  %v485_v33 = vadd.f32 %v453_v17, %v3170_v48  ;;  %v3173_v50 = vld [vmem:[#allocation44_spill] sm:$0xff]  ;;  %v3177_v63 = vld [vmem:[#allocation55_spill] sm:$0xff]  ;;  %v3179_v37 = vld [vmem:[#allocation21_spill] sm:$0xff] }
 0x176   :  { %v486_v44 = vadd.f32 %v454_v39, %v3171_v61  ;;  %v682_v4 = vrot.slane %v668_v11, %v3172_v40  ;;  %v2688_v16 = vadd.f32 %v457_v47, %v3173_v50  ;;  %v2691_v22 = vadd.f32 %v458_v59, %v3174_v46  ;;  %v3178_v12 = vld [vmem:[#allocation40_spill] sm:$0xff]  ;;  %v3180_v17 = vld [vmem:[#allocation27_spill] sm:$0xff]  ;;  %v3181_v47 = vld [vmem:[#allocation50_spill] sm:$0xff] }
 0x177   :  { %v2694_v6 = vadd.f32 %v460_v10, %v3175_v18  ;;  %v683_v45 = vcombine.high %v3177_v63, %v3177_v63  ;;  %v2699_v28 = vadd.f32 %v3178_v12, %v461_v27  ;;  %v2702_v62 = vadd.f32 %v3179_v37, %v462_v5  ;;  %v3183_v10 = vld [vmem:[#allocation15_spill] sm:$0xff]  ;;  %v3189_v53 = vld [vmem:[#allocation46_spill] sm:$0xff]  ;;  %v3197_v12 = vld [vmem:[#allocation48_spill] sm:$0xff] }
 0x178   :  { %v2705_v11 = vadd.f32 %v3180_v17, %v463_v24  ;;  %v2708_v41 = vadd.f32 %v3181_v47, %v464_v3  ;;  %v2711_v8 = vadd.f32 %v3182_v60, %v465_v26  ;;  %v2714_v20 = vadd.f32 %v3183_v10, %v466_v55  ;;  %v89_v55 = vld [vmem:[%s3097_s2 + $0xd0] sm:$0xff]  ;;  %v3188_v7 = vld [vmem:[#allocation23_spill] sm:$0xff]  ;;  %v3194_v50 = vld [vmem:[#allocation38_spill] sm:$0xff] }
 0x179   :  { %3176 = vst [vmem:[#allocation53_spill] sm:$0xff] %v2694_v6  ;;  %v2717_v0 = vadd.f32 %v3184_v21, %v467_v57  ;;  %v684_v27 = vcombine.high %v682_v4, %v682_v4  ;;  %v2720_v5 = vadd.f32 %v3185_v56, %v468_v29  ;;  %v2723_v2 = vadd.f32 %v3186_v23, %v469_v49  ;;  %v3190_v29 = vld [vmem:[#allocation36_spill] sm:$0xff]  ;;  %v3193_v48 = vld [vmem:[#allocation47_spill] sm:$0xff]  ;;  %v3204_v23 = vld [vmem:[#allocation49_spill] sm:$0xff] }
 0x17a   :  { %v2726_v3 = vadd.f32 %v3187_v30, %v470_v14  ;;  %v691_v26 = vrot.slane %v3177_v63, %v3172_v40  ;;  %v2734_v42 = vadd.f32 %v3188_v7, %v471_v34  ;;  %v2737_v39 = vadd.f32 %v3189_v53, %v472_v31  ;;  %v3191_v14 = vld [vmem:[#allocation18_spill] sm:$0xff]  ;;  %v3192_v49 = vld [vmem:[#allocation24_spill] sm:$0xff]  ;;  %v3195_v31 = vld [vmem:[#allocation19_spill] sm:$0xff] }
 0x17b   :  { %v2740_v59 = vadd.f32 %v3190_v29, %v473_v19  ;;  %v705_v24 = vrot.slane %v683_v45, %v3172_v40  ;;  %v2744_v57 = vadd.f32 %v3191_v14, %v474_v58  ;;  %v2747_v52 = vadd.f32 %v3192_v49, %v475_v32  ;;  %v3196_v45 = vld [vmem:[#allocation25_spill] sm:$0xff]  ;;  %v3199_v47 = vld [vmem:[#allocation39_spill] sm:$0xff]  ;;  %v3201_v10 = vld [vmem:[#allocation8_spill] sm:$0xff] }
 0x17c   :  { %v2750_v61 = vadd.f32 %v3193_v48, %v476_v36  ;;  %v698_v34 = vrot.slane %v682_v4, %v3172_v40  ;;  %v2754_v46 = vadd.f32 %v3194_v50, %v477_v43  ;;  %v2757_v18 = vadd.f32 %v3195_v31, %v478_v9  ;;  %v3198_v36 = vld [vmem:[#allocation13_spill] sm:$0xff]  ;;  %v3200_v43 = vld [vmem:[#allocation20_spill] sm:$0xff]  ;;  %v3206_v29 = vld [vmem:[#allocation30_spill] sm:$0xff] }
 0x17d   :  { %v712_v19 = vrot.slane %v684_v27, %v3172_v40  ;;  %v313_v63 = vadd.f32 %v260_v25, %v89_v55  ;;  %v2761_v58 = vadd.f32 %v3196_v45, %v479_v38  ;;  %v2764_v32 = vadd.f32 %v3197_v12, %v480_v15  ;;  %v3202_v21 = vld [vmem:[#allocation56_spill] sm:$0xff]  ;;  %v280_v25 = vpop.permute.xlu1 %279  ;;  %v3203_v15 = vld [vmem:[#allocation26_spill] sm:$0xff]  ;;  %v3205_v7 = vld [vmem:[#allocation41_spill] sm:$0xff] }
 0x17e   :  { %v713_v37 = vcombine.high %v691_v26, %v691_v26  ;;  %v740_v17 = vrot.slane %v691_v26, %v3198_v36  ;;  %v2768_v4 = vadd.f32 %v3199_v47, %v481_v35  ;;  %v2771_v60 = vadd.f32 %v3200_v43, %v482_v54  ;;  %v93_v38 = vld [vmem:[%s3097_s2 + $0xf0] sm:$0xff]  ;;  %v3208_v48 = vld [vmem:[#allocation10_spill] sm:$0xff]  ;;  %v3211_v47 = vld [vmem:[#allocation37_spill] sm:$0xff] }
 0x17f   :  { %v715_v9 = vcombine.high %v705_v24, %v705_v24  ;;  %v455_v27 = vmul.f32 %v3202_v21, %v3201_v10  ;;  %v2779_v56 = vadd.f32 %v3203_v15, %v483_v1  ;;  %v2782_v30 = vadd.f32 %v3204_v23, %v484_v13  ;;  %v3210_v12 = vld [vmem:[#allocation16_spill] sm:$0xff] }
 0x180   :  { %v714_v35 = vcombine.high %v698_v34, %v698_v34  ;;  %v744_v26 = vrot.slane %v705_v24, %v3198_v36  ;;  %v716_v54 = vcombine.high %v712_v19, %v712_v19  ;;  %v2788_v53 = vadd.f32 %v3205_v7, %v485_v33 }
 0x181   :  { %v2785_v55 = vadd.f32 %v455_v27, %v313_v63  ;;  %v2791_v14 = vadd.f32 %v3206_v29, %v486_v44  ;;  %v748_v49 = vrot.slane %v713_v37, %v3198_v36  ;;  %v777_v1 = vmul.f32 %v740_v17, %v3208_v48  ;;  %v3209_v63 = vld [vmem:[#allocation11_spill] sm:$0xff] }
 0x182   :  { %v2797_v13 = vmul.f32 %v2630_v51, %v3201_v10  ;;  %v2799_v50 = vadd.f32 %v280_v25, %v93_v38  ;;  %v752_v24 = vrot.slane %v715_v9, %v3198_v36  ;;  %v756_v31 = vrot.slane %v698_v34, %v3198_v36 }
 0x183   :  { %3207 = vst [vmem:[#allocation43_spill] sm:$0xff] %v2791_v14  ;;  %v760_v33 = vrot.slane %v712_v19, %v3198_v36  ;;  %v778_v45 = vmul.f32 %v740_v17, %v3209_v63  ;;  %v2806_v44 = vrot.slane %v714_v35, %v3198_v36  ;;  %v779_v37 = vmul.f32 %v740_v17, %v3210_v12 }
 0x184   :  { %v780_v43 = vmul.f32 %v740_v17, %v3211_v47  ;;  %v781_v51 = vmul.f32 %v744_v26, %v3208_v48  ;;  %v2812_v10 = vrot.slane %v716_v54, %v3198_v36  ;;  %v782_v9 = vmul.f32 %v744_v26, %v3209_v63 }
 0x185   :  { %v783_v34 = vmul.f32 %v744_v26, %v3210_v12  ;;  %v784_v19 = vmul.f32 %v744_v26, %v3211_v47  ;;  %v785_v27 = vmul.f32 %v748_v49, %v3208_v48  ;;  %v786_v38 = vmul.f32 %v748_v49, %v3209_v63 }
 0x186   :  { %v787_v25 = vmul.f32 %v748_v49, %v3210_v12  ;;  %v809_v15 = vadd.f32 %v777_v1, %v2699_v28  ;;  %v788_v17 = vmul.f32 %v748_v49, %v3211_v47  ;;  %v789_v23 = vmul.f32 %v752_v24, %v3208_v48 }
 0x187   :  { %v790_v36 = vmul.f32 %v752_v24, %v3209_v63  ;;  %v810_v35 = vadd.f32 %v778_v45, %v2702_v62  ;;  %v791_v54 = vmul.f32 %v752_v24, %v3210_v12  ;;  %v792_v26 = vmul.f32 %v752_v24, %v3211_v47 }
 0x188   :  { %v793_v7 = vmul.f32 %v756_v31, %v3208_v48  ;;  %v811_v29 = vadd.f32 %v779_v37, %v2705_v11  ;;  %v794_v40 = vmul.f32 %v756_v31, %v3209_v63  ;;  %v795_v28 = vmul.f32 %v756_v31, %v3210_v12  ;;  %v265_v37 = vpop.permute.xlu1 %264 }
 0x189   :  { %v796_v49 = vmul.f32 %v756_v31, %v3211_v47  ;;  %v812_v1 = vadd.f32 %v780_v43, %v2708_v41  ;;  %v797_v6 = vmul.f32 %v760_v33, %v3208_v48  ;;  %v798_v62 = vmul.f32 %v760_v33, %v3209_v63 }
 0x18a   :  { %v813_v45 = vadd.f32 %v781_v51, %v2711_v8  ;;  %1857 = vtanh.f32 %v809_v15  ;;  %v799_v24 = vmul.f32 %v760_v33, %v3210_v12  ;;  %v800_v14 = vmul.f32 %v760_v33, %v3211_v47 }
 0x18b   :  { %v814_v11 = vadd.f32 %v782_v9, %v2714_v20  ;;  %1859 = vtanh.f32 %v810_v35  ;;  %v801_v31 = vmul.f32 %v2806_v44, %v3208_v48  ;;  %v802_v41 = vmul.f32 %v2806_v44, %v3209_v63  ;;  %v3217_v35 = vld [vmem:[#allocation43_spill] sm:$0xff] }
 0x18c   :  { %v815_v43 = vadd.f32 %v783_v34, %v2717_v0  ;;  %1861 = vtanh.f32 %v811_v29  ;;  %v805_v8 = vmul.f32 %v2812_v10, %v3208_v48  ;;  %v806_v51 = vmul.f32 %v2812_v10, %v3209_v63  ;;  %v90_v0 = vld [vmem:[%s3097_s2 + $0xd8] sm:$0xff] }
 0x18d   :  { %v816_v33 = vadd.f32 %v784_v19, %v2720_v5  ;;  %1863 = vtanh.f32 %v812_v1  ;;  %v2851_v20 = vmul.f32 %v2812_v10, %v3211_v47  ;;  %v817_v9 = vadd.f32 %v785_v27, %v2723_v2  ;;  %v3218_v29 = vld [vmem:[#allocation53_spill] sm:$0xff] }
 0x18e   :  { %v818_v15 = vadd.f32 %v786_v38, %v2726_v3  ;;  %1865 = vtanh.f32 %v813_v45  ;;  %v819_v48 = vadd.f32 %v787_v25, %v2734_v42  ;;  %v820_v63 = vadd.f32 %v788_v17, %v2737_v39  ;;  %v2866_v42 = vpop.permute.xlu1 %879  ;;  %v3213_v25 = vld [vmem:[#allocation9_spill] sm:$0xff] }
 0x18f   :  { %v821_v5 = vadd.f32 %v789_v23, %v2740_v59  ;;  %1867 = vtanh.f32 %v814_v11  ;;  %v822_v34 = vadd.f32 %v790_v36, %v2744_v57  ;;  %v823_v19 = vadd.f32 %v791_v54, %v2747_v52 }
 0x190   :  { %v824_v2 = vadd.f32 %v792_v26, %v2750_v61  ;;  %1869 = vtanh.f32 %v815_v43  ;;  %v825_v3 = vadd.f32 %v793_v7, %v2754_v46  ;;  %v826_v27 = vadd.f32 %v794_v40, %v2757_v18  ;;  %v3212_v61 = vld [vmem:[#allocation31_spill] sm:$0xff]  ;;  %v2877_v18 = vpop.permute.xlu0 %884 }
 0x191   :  { %1871 = vtanh.f32 %v816_v33  ;;  %v314_v38 = vadd.f32 %v265_v37, %v90_v0  ;;  %v827_v39 = vadd.f32 %v795_v28, %v2761_v58  ;;  %v828_v59 = vadd.f32 %v796_v49, %v2764_v32  ;;  %v3214_v32 = vld [vmem:[#allocation42_spill] sm:$0xff] }
 0x192   :  { %1873 = vtanh.f32 %v817_v9  ;;  %v491_v57 = vadd.f32 %v2797_v13, %v2799_v50  ;;  %v829_v52 = vadd.f32 %v797_v6, %v2768_v4  ;;  %v661_v46 = vadd.f32 %v3212_v61, %v2785_v55  ;;  %v3215_v4 = vld [vmem:[#allocation32_spill] sm:$0xff]  ;;  %v2895_v7 = vpop.permute.xlu1 %889 }
 0x193   :  { %1875 = vtanh.f32 %v818_v15  ;;  %v456_v40 = vmul.f32 %v3202_v21, %v3213_v25  ;;  %v830_v17 = vadd.f32 %v798_v62, %v2771_v60  ;;  %v831_v58 = vadd.f32 %v799_v24, %v2779_v56  ;;  %v3216_v60 = vld [vmem:[#allocation33_spill] sm:$0xff]  ;;  %v3220_v62 = vld [vmem:[#allocation52_spill] sm:$0xff] }
 0x194   :  { %1877 = vtanh.f32 %v819_v48  ;;  %v663_v23 = vadd.f32 %v3214_v32, %v2688_v16  ;;  %v803_v6 = vmul.f32 %v2806_v44, %v3210_v12  ;;  %v664_v55 = vadd.f32 %v3215_v4, %v2691_v22 }
 0x195   :  { %1879 = vtanh.f32 %v820_v63  ;;  %v488_v13 = vadd.f32 %v456_v40, %v314_v38  ;;  %v832_v21 = vadd.f32 %v800_v14, %v2782_v30  ;;  %v833_v50 = vadd.f32 %v801_v31, %v2788_v53  ;;  %v3219_v30 = vld [vmem:[#allocation51_spill] sm:$0xff] }
 0x196   :  { %1881 = vtanh.f32 %v821_v5  ;;  %v665_v36 = vadd.f32 %v3216_v60, %v491_v57  ;;  %v834_v54 = vadd.f32 %v802_v41, %v3217_v35  ;;  %v2891_v16 = vadd.f32 %v803_v6, %v661_v46 }
 0x197   :  { %v1858_v56 = vpop.eup %1857  ;;  %1883 = vtanh.f32 %v822_v34  ;;  %v807_v26 = vmul.f32 %v2812_v10, %v3210_v12  ;;  %v666_v14 = vadd.f32 %v3219_v30, %v3218_v29  ;;  %v2899_v28 = vadd.f32 %v805_v8, %v663_v23  ;;  %v2906_v10 = vpop.permute.xlu0 %894 }
 0x198   :  { %v1860_v22 = vpop.eup %1859  ;;  %1885 = vtanh.f32 %v823_v19  ;;  %v897_v53 = vmul.f32 %v1858_v56, %v2866_v42  ;;  %v2902_v1 = vadd.f32 %v806_v51, %v664_v55  ;;  %v662_v45 = vadd.f32 %v3220_v62, %v488_v13 }
 0x199   :  { %v1862_v49 = vpop.eup %1861  ;;  %1887 = vtanh.f32 %v824_v2  ;;  %v898_v24 = vmul.f32 %v1860_v22, %v2877_v18  ;;  %v2908_v11 = vadd.f32 %v807_v26, %v665_v36  ;;  %v804_v43 = vmul.f32 %v2806_v44, %v3211_v47 }
 0x19a   :  { %v1864_v12 = vpop.eup %1863  ;;  %1889 = vtanh.f32 %v825_v3  ;;  %v930_v37 = vsel %vm929_vm3, %v897_v53, 0.0  ;;  %v899_v31 = vmul.f32 %v1862_v49, %v2895_v7  ;;  %v840_v63 = vadd.f32 %v2851_v20, %v666_v14 }
 0x19b   :  { %v1866_v41 = vpop.eup %1865  ;;  %1891 = vtanh.f32 %v826_v27  ;;  %v931_v8 = vsel %vm929_vm3, %v898_v24, 0.0  ;;  %v900_v51 = vmul.f32 %v1864_v12, %v2906_v10  ;;  %v836_v5 = vadd.f32 %v804_v43, %v662_v45 }
 0x19c   :  { %v1868_v33 = vpop.eup %1867  ;;  %1893 = vtanh.f32 %v827_v39  ;;  %v901_v9 = vmul.f32 %v1866_v41, %v2866_v42  ;;  %v932_v15 = vadd.f32 %v931_v8, %v930_v37  ;;  %v933_v0 = vsel %vm929_vm3, %v899_v31, 0.0 }
 0x19d   :  { %v1870_v48 = vpop.eup %1869  ;;  %1895 = vtanh.f32 %v828_v59  ;;  %v902_v34 = vmul.f32 %v1868_v33, %v2877_v18  ;;  %v935_v39 = vsel %vm929_vm3, %v900_v51, 0.0 }
 0x19e   :  { %v1872_v19 = vpop.eup %1871  ;;  %1897 = vtanh.f32 %v829_v52  ;;  %v943_v44 = vsel %vm929_vm3, %v901_v9, 0.0  ;;  %v903_v47 = vmul.f32 %v1870_v48, %v2895_v7  ;;  %v934_v2 = vadd.f32 %v933_v0, %v932_v15 }
 0x19f   :  { %v1874_v3 = vpop.eup %1873  ;;  %1899 = vtanh.f32 %v830_v17  ;;  %v944_v27 = vsel %vm929_vm3, %v902_v34, 0.0  ;;  %v904_v38 = vmul.f32 %v1872_v19, %v2906_v10 }
 0x1a0   :  { %v1876_v59 = vpop.eup %1875  ;;  %1901 = vtanh.f32 %v831_v58  ;;  %v905_v20 = vmul.f32 %v1874_v3, %v2866_v42  ;;  %v945_v57 = vadd.f32 %v944_v27, %v943_v44  ;;  %v936_v61 = vadd.f32 %v935_v39, %v934_v2 }
 0x1a1   :  { %v1878_v52 = vpop.eup %1877  ;;  %1903 = vtanh.f32 %v832_v21  ;;  %v906_v46 = vmul.f32 %v1876_v59, %v2877_v18  ;;  %v946_v25 = vsel %vm929_vm3, %v903_v47, 0.0  ;;  %v948_v40 = vsel %vm929_vm3, %v904_v38, 0.0 }
 0x1a2   :  { %v1880_v17 = vpop.eup %1879  ;;  %1905 = vtanh.f32 %v833_v50  ;;  %v956_v32 = vsel %vm929_vm3, %v905_v20, 0.0  ;;  %v907_v23 = vmul.f32 %v1878_v52, %v2895_v7  ;;  %v947_v6 = vadd.f32 %v946_v25, %v945_v57 }
 0x1a3   :  { %v1882_v58 = vpop.eup %1881  ;;  %1907 = vtanh.f32 %v834_v54  ;;  %v957_v4 = vsel %vm929_vm3, %v906_v46, 0.0  ;;  %v908_v55 = vmul.f32 %v1880_v17, %v2906_v10  ;;  %v937_v13 = vrot.slane %v936_v61, 4 }
 0x1a4   :  { %v1884_v21 = vpop.eup %1883  ;;  %1909 = vtanh.f32 %v2891_v16  ;;  %v909_v60 = vmul.f32 %v1882_v58, %v2866_v42  ;;  %v958_v36 = vadd.f32 %v957_v4, %v956_v32  ;;  %v949_v56 = vadd.f32 %v948_v40, %v947_v6 }
 0x1a5   :  { %v1886_v50 = vpop.eup %1885  ;;  %1911 = vtanh.f32 %v2899_v28  ;;  %v910_v35 = vmul.f32 %v1884_v21, %v2877_v18  ;;  %v959_v26 = vsel %vm929_vm3, %v907_v23, 0.0  ;;  %v938_v54 = vadd.f32 %v937_v13, %v936_v61 }
 0x1a6   :  { %v1888_v22 = vpop.eup %1887  ;;  %1913 = vtanh.f32 %v2902_v1  ;;  %v969_v29 = vsel %vm929_vm3, %v909_v60, 0.0  ;;  %v911_v30 = vmul.f32 %v1886_v50, %v2895_v7  ;;  %v960_v16 = vadd.f32 %v959_v26, %v958_v36 }
 0x1a7   :  { %v1890_v14 = vpop.eup %1889  ;;  %1915 = vtanh.f32 %v2908_v11  ;;  %v970_v53 = vsel %vm929_vm3, %v910_v35, 0.0  ;;  %v912_v28 = vmul.f32 %v1888_v22, %v2906_v10  ;;  %v939_v49 = vrot.slane %v938_v54, 2 }
 0x1a8   :  { %v1892_v62 = vpop.eup %1891  ;;  %1917 = vtanh.f32 %v840_v63  ;;  %v913_v45 = vmul.f32 %v1890_v14, %v2866_v42  ;;  %v971_v24 = vadd.f32 %v970_v53, %v969_v29  ;;  %v972_v1 = vsel %vm929_vm3, %v911_v30, 0.0 }
 0x1a9   :  { %v1894_v12 = vpop.eup %1893  ;;  %1919 = vtanh.f32 %v836_v5  ;;  %v914_v37 = vmul.f32 %v1892_v62, %v2877_v18  ;;  %v940_v31 = vadd.f32 %v939_v49, %v938_v54  ;;  %v950_v41 = vrot.slane %v949_v56, 4 }
 0x1aa   :  { %v1896_v43 = vpop.eup %1895  ;;  %v982_v11 = vsel %vm929_vm3, %v913_v45, 0.0  ;;  %v915_v8 = vmul.f32 %v1894_v12, %v2895_v7  ;;  %v973_v51 = vadd.f32 %v972_v1, %v971_v24  ;;  %v961_v48 = vsel %vm929_vm3, %v908_v55, 0.0 }
 0x1ab   :  { %v1898_v33 = vpop.eup %1897  ;;  %v983_v9 = vsel %vm929_vm3, %v914_v37, 0.0  ;;  %v916_v15 = vmul.f32 %v1896_v43, %v2906_v10  ;;  %v951_v0 = vadd.f32 %v950_v41, %v949_v56  ;;  %v962_v44 = vadd.f32 %v961_v48, %v960_v16 }
 0x1ac   :  { %v1900_v63 = vpop.eup %1899  ;;  %v917_v5 = vmul.f32 %v1898_v33, %v2866_v42  ;;  %v984_v34 = vadd.f32 %v983_v9, %v982_v11  ;;  %v985_v19 = vsel %vm929_vm3, %v915_v8, 0.0  ;;  %v941_v3 = vrot.slane %v940_v31, 1 }
 0x1ad   :  { %v1902_v47 = vpop.eup %1901  ;;  %v918_v2 = vmul.f32 %v1900_v63, %v2877_v18  ;;  %v952_v27 = vrot.slane %v951_v0, 2  ;;  %v974_v38 = vsel %vm929_vm3, %v912_v28, 0.0  ;;  %v963_v57 = vrot.slane %v962_v44, 4 }
 0x1ae   :  { %v1904_v39 = vpop.eup %1903  ;;  %v995_v59 = vsel %vm929_vm3, %v917_v5, 0.0  ;;  %v919_v20 = vmul.f32 %v1902_v47, %v2895_v7  ;;  %v975_v61 = vadd.f32 %v974_v38, %v973_v51  ;;  %v986_v40 = vadd.f32 %v985_v19, %v984_v34 }
 0x1af   :  { %v1906_v52 = vpop.eup %1905  ;;  %v920_v46 = vmul.f32 %v1904_v39, %v2906_v10  ;;  %v953_v25 = vadd.f32 %v952_v27, %v951_v0  ;;  %v964_v32 = vadd.f32 %v963_v57, %v962_v44  ;;  %v987_v6 = vsel %vm929_vm3, %v916_v15, 0.0 }
 0x1b0   :  { %v1908_v17 = vpop.eup %1907  ;;  %v976_v23 = vrot.slane %v975_v61, 4  ;;  %v996_v58 = vsel %vm929_vm3, %v918_v2, 0.0  ;;  %v921_v55 = vmul.f32 %v1906_v52, %v2866_v42  ;;  %v942_v13 = vadd.f32 %v941_v3, %v940_v31 }
 0x1b1   :  { %v1910_v4 = vpop.eup %1909  ;;  %v988_v21 = vadd.f32 %v987_v6, %v986_v40  ;;  %v997_v60 = vadd.f32 %v996_v58, %v995_v59  ;;  %v922_v56 = vmul.f32 %v1908_v17, %v2877_v18  ;;  %v965_v50 = vrot.slane %v964_v32, 2 }
 0x1b2   :  { %v1912_v36 = vpop.eup %1911  ;;  %v977_v35 = vadd.f32 %v976_v23, %v975_v61  ;;  %v998_v26 = vsel %vm929_vm3, %v919_v20, 0.0  ;;  %v923_v22 = vmul.f32 %v1910_v4, %v2895_v7  ;;  %v954_v29 = vrot.slane %v953_v25, 1 }
 0x1b3   :  { %v1914_v54 = vpop.eup %1913  ;;  %v989_v30 = vrot.slane %v988_v21, 4  ;;  %v999_v16 = vadd.f32 %v998_v26, %v997_v60  ;;  %v925_v53 = vmul.f32 %v1912_v36, %v2866_v42  ;;  %v966_v28 = vadd.f32 %v965_v50, %v964_v32 }
 0x1b4   :  { %v1916_v14 = vpop.eup %1915  ;;  %v978_v49 = vrot.slane %v977_v35, 2  ;;  %v1000_v62 = vsel %vm929_vm3, %v920_v46, 0.0  ;;  %v926_v24 = vmul.f32 %v1914_v54, %v2877_v18  ;;  %v1008_v37 = vsel %vm929_vm3, %v921_v55, 0.0 }
 0x1b5   :  { %v1918_v45 = vpop.eup %1917  ;;  %v990_v1 = vadd.f32 %v989_v30, %v988_v21  ;;  %v1001_v12 = vadd.f32 %v1000_v62, %v999_v16  ;;  %v927_v41 = vmul.f32 %v1916_v14, %v2895_v7  ;;  %v967_v43 = vrot.slane %v966_v28, 1  ;;  %v3221_v30 = vld [vmem:[#allocation14_spill] sm:$0xff] }
 0x1b6   :  { %v1920_v31 = vpop.eup %1919  ;;  %v979_v11 = vadd.f32 %v978_v49, %v977_v35  ;;  %v1009_v8 = vsel %vm929_vm3, %v922_v56, 0.0  ;;  %v955_v15 = vadd.f32 %v954_v29, %v953_v25  ;;  %v1011_v18 = vsel %vm929_vm3, %v923_v22, 0.0  ;;  %v1037_v22 = vpop.permute.xlu1 %1036 }
 0x1b7   :  { %v924_v42 = vmul.f32 %v1920_v31, %v2906_v10  ;;  %v991_v51 = vrot.slane %v990_v1, 2  ;;  %v1002_v33 = vrot.slane %v1001_v12, 4  ;;  %v1010_v9 = vadd.f32 %v1009_v8, %v1008_v37  ;;  %v1125_v31 = vld [vmem:[%s3099_s4] sm:$0xff] }
 0x1b8   :  { %v980_v0 = vrot.slane %v979_v11, 1  ;;  %v1021_v48 = vsel %vm929_vm3, %v925_v53, 0.0  ;;  %v928_v63 = vmul.f32 %v1918_v45, %v2906_v10  ;;  %v968_v19 = vadd.f32 %v967_v43, %v966_v28 }
 0x1b9   :  { %v1003_v5 = vadd.f32 %v1002_v33, %v1001_v12  ;;  %v1012_v34 = vadd.f32 %v1011_v18, %v1010_v9  ;;  %v1013_v7 = vsel %vm929_vm3, %v924_v42, 0.0  ;;  %v992_v44 = vadd.f32 %v991_v51, %v990_v1  ;;  %v1126_v1 = vld [vmem:[%s3099_s4 + $0x8] sm:$0xff]  ;;  %v1128_v12 = vld [vmem:[%s3099_s4 + $0x18] sm:$0xff]  ;;  %v3222_v42 = vld [vmem:[#allocation12_spill] sm:$0xff] }
 0x1ba   :  { %v1022_v47 = vsel %vm929_vm3, %v926_v24, 0.0  ;;  %v1024_v2 = vsel %vm929_vm3, %v927_v41, 0.0  ;;  %v981_v3 = vadd.f32 %v980_v0, %v979_v11  ;;  %v1048_v59 = vsel %vm1047_vm4, %v955_v15, %v942_v13  ;;  %v1127_v41 = vld [vmem:[%s3099_s4 + $0x10] sm:$0xff]  ;;  %v1130_v9 = vld [vmem:[%s3099_s4 + $0x28] sm:$0xff] }
 0x1bb   :  { %v1004_v27 = vrot.slane %v1003_v5, 2  ;;  %v1014_v38 = vadd.f32 %v1013_v7, %v1012_v34  ;;  %v1023_v39 = vadd.f32 %v1022_v47, %v1021_v48  ;;  %v1026_v61 = vsel %vm929_vm3, %v928_v63, 0.0  ;;  %v1132_v48 = vld [vmem:[%s3099_s4 + $0x38] sm:$0xff]  ;;  %v1129_v63 = vld [vmem:[%s3099_s4 + $0x20] sm:$0xff]  ;;  %v1131_v34 = vld [vmem:[%s3099_s4 + $0x30] sm:$0xff] }
 0x1bc   :  { %v1050_v52 = vsel %vm1049_vm5, %v968_v19, %v1048_v59  ;;  %v993_v46 = vrot.slane %v992_v44, 1  ;;  %vm1038_vm11 = vcmp.ge.s32.totalorder %v3221_v30, %v1037_v22  ;;  %v1974_v37 = vmov 0.0   ;;  %v1134_v7 = vld [vmem:[%s3099_s4 + $0x48] sm:$0xff]  ;;  %v1136_v47 = vld [vmem:[%s3099_s4 + $0x58] sm:$0xff] }
 0x1bd   :  { %v1015_v20 = vrot.slane %v1014_v38, 4  ;;  %v1025_v57 = vadd.f32 %v1024_v2, %v1023_v39  ;;  %v1005_v10 = vadd.f32 %v1004_v27, %v1003_v5  ;;  %v1052_v17 = vsel %vm1051_vm6, %v981_v3, %v1050_v52  ;;  %1788 = vmatprep.subr.mxu0 %v1974_v37  ;;  %1795 = vmatprep.subr.mxu1 %v1974_v37  ;;  %v1133_v2 = vld [vmem:[%s3099_s4 + $0x40] sm:$0xff]  ;;  %v1138_v39 = vld [vmem:[%s3099_s4 + $0x68] sm:$0xff] }
 0x1be   :  { %v994_v58 = vadd.f32 %v993_v46, %v992_v44  ;;  %1789 = vmatpush3.msra.mxu0 %v1126_v1  ;;  %1796 = vmatpush3.msra.mxu1 %v1128_v12 }
 0x1bf   :  { %v1016_v25 = vadd.f32 %v1015_v20, %v1014_v38  ;;  %v1027_v40 = vadd.f32 %v1026_v61, %v1025_v57  ;;  %v1006_v6 = vrot.slane %v1005_v10, 1  ;;  %1790 = vmatprep.subr.mxu0 %v1974_v37  ;;  %1792 = vmatprep.mubr.msk.f32.mxu0 %vm1975_vm12, %v1974_v37  ;;  %v1135_v38 = vld [vmem:[%s3099_s4 + $0x50] sm:$0xff]  ;;  %v1140_v20 = vld [vmem:[%s3099_s4 + $0x78] sm:$0xff]  ;;  %v1137_v57 = vld [vmem:[%s3099_s4 + $0x60] sm:$0xff] }
 0x1c0   :  { %v1054_v60 = vsel %vm1053_vm7, %v994_v58, %v1052_v17  ;;  %1791 = vmatpush3.msra.mxu0 %v1125_v31  ;;  %1797 = vmatprep.subr.mxu1 %v1974_v37  ;;  %v1139_v61 = vld [vmem:[%s3099_s4 + $0x70] sm:$0xff] }
 0x1c1   :  { %v1017_v32 = vrot.slane %v1016_v25, 2  ;;  %v1028_v23 = vrot.slane %v1027_v40, 4  ;;  %v1007_v36 = vadd.f32 %v1006_v6, %v1005_v10  ;;  %1798 = vmatpush3.msra.mxu1 %v1127_v41  ;;  %1802 = vmatprep.subr.mxu0 %v1974_v37 }
 0x1c2   :  { %1799 = vmatprep.mubr.msk.f32.mxu1 %vm1975_vm12, %v1974_v37  ;;  %1809 = vmatprep.subr.mxu1 %v1974_v37 }
 0x1c3   :  { %v1018_v4 = vadd.f32 %v1017_v32, %v1016_v25  ;;  %v1029_v55 = vadd.f32 %v1028_v23, %v1027_v40  ;;  %v1056_v35 = vsel %vm1055_vm8, %v1007_v36, %v1054_v60 }
 0x1c5   :  { %v1019_v13 = vrot.slane %v1018_v4, 1  ;;  %v1030_v21 = vrot.slane %v1029_v55, 2 }
 0x1c7   :  { %v1020_v56 = vadd.f32 %v1019_v13, %v1018_v4  ;;  %v1031_v50 = vadd.f32 %v1030_v21, %v1029_v55 }
 0x1c9   :  { %v1032_v26 = vrot.slane %v1031_v50, 1  ;;  %v1058_v54 = vsel %vm1057_vm9, %v1020_v56, %v1056_v35 }
 0x1cb   :  { %v1033_v29 = vadd.f32 %v1032_v26, %v1031_v50 }
 0x1cd   :  { %v1060_v16 = vsel %vm1059_vm10, %v1033_v29, %v1058_v54 }
 0x1ce   :  { %v1062_v14 = vsel %vm1038_vm11, -1e+30, %v1060_v16 }
 0x1cf   :  { %v1063_v53 = vsel %vm929_vm3, %v1062_v14, -inf }
 0x1d0   :  { %1064 = vmax.xlane.f32.xlu0 %v1063_v53 }
 0x259   :  { %v1065_v28 = vpop.xlane.xlu0 %1064 }
 0x25a   :  { %v1066_v49 = vsub.f32 %v1062_v14, %v1065_v28 }
 0x25c   :  { %v1067_v62 = vmul.f32 1.442695, %v1066_v49 }
 0x25e   :  { %1921 = vpow2.f32 %v1067_v62 }
 0x26b   :  { %v1922_v45 = vpop.eup %1921 }
 0x26c   :  { %v1069_v24 = vsel %vm929_vm3, %v1922_v45, 0.0 }
 0x26d   :  { %1070 = vadd.xlane.f32.xlu1 %v1069_v24 }
 0x2f6   :  { %v1071_v43 = vpop.xlane.xlu1 %1070 }
 0x2f7   :  { %1923 = vrcp.f32 %v1071_v43 }
 0x304   :  { %v1924_v11 = vpop.eup %1923 }
 0x305   :  { %v1073_v8 = vmul.f32 %v1924_v11, %v1922_v45 }
 0x307   :  { %1074 = vst.msk [vmem:[#allocation4] sm:$0xff] %vm929_vm3, %v1073_v8  ;;  %v1083_v51 = vrot.slane %v1073_v8, %v3222_v42  ;;  %v1076_v0 = vcombine.high %v1073_v8, %v1073_v8 }
 0x309   :  { %v1099_v33 = vrot.slane %v1083_v51, %v3222_v42  ;;  %v1091_v15 = vcombine.high %v1083_v51, %v1083_v51  ;;  %v1090_v19 = vrot.slane %v1076_v0, %v3222_v42 }
 0x30b   :  { %1793 = vmatmul.mubr.msk.f32.vlgmr.msra.gmra.mxu0 %vm929_vm3, %v1099_v33  ;;  %v1113_v18 = vrot.slane %v1091_v15, %v3222_v42  ;;  %v1121_v5 = vcombine.high %v1099_v33, %v1099_v33  ;;  %v1092_v3 = vcombine.high %v1090_v19, %v1090_v19  ;;  %v1106_v27 = vrot.slane %v1090_v19, %v3222_v42 }
 0x30c   :  { %1803 = vmatpush3.msra.mxu0 %v1130_v9  ;;  %1806 = vmatprep.mubr.msk.f32.mxu0 %vm1975_vm12, %v1974_v37 }
 0x30d   :  { %1800 = vmatmul.mubr.msk.f32.vlgmr.msra.gmra.mxu1 %vm929_vm3, %v1113_v18  ;;  %1804 = vmatprep.subr.mxu0 %v1974_v37  ;;  %v1123_v44 = vcombine.high %v1113_v18, %v1113_v18  ;;  %v1120_v59 = vrot.slane %v1092_v3, %v3222_v42  ;;  %v1122_v10 = vcombine.high %v1106_v27, %v1106_v27 }
 0x30e   :  { %1810 = vmatpush3.msra.mxu1 %v1132_v48  ;;  %1805 = vmatpush3.msra.mxu0 %v1129_v63 }
 0x30f   :  { %1811 = vmatprep.subr.mxu1 %v1974_v37  ;;  %1807 = vmatmul.mubr.msk.f32.vlgmr.msra.gmra.mxu0 %vm929_vm3, %v1121_v5  ;;  %v1124_v52 = vcombine.high %v1120_v59, %v1120_v59 }
 0x310   :  { %1812 = vmatpush3.msra.mxu1 %v1131_v34  ;;  %1816 = vmatprep.subr.mxu0 %v1974_v37 }
 0x311   :  { %1813 = vmatprep.mubr.msk.f32.mxu1 %vm1975_vm12, %v1974_v37  ;;  %1817 = vmatpush3.msra.mxu0 %v1134_v7 }
 0x312   :  { %1823 = vmatprep.subr.mxu1 %v1974_v37  ;;  %1814 = vmatmul.mubr.msk.f32.vlgmr.msra.gmra.mxu1 %vm929_vm3, %v1123_v44 }
 0x313   :  { %1818 = vmatprep.subr.mxu0 %v1974_v37  ;;  %1824 = vmatpush3.msra.mxu1 %v1136_v47 }
 0x314   :  { %1819 = vmatpush3.msra.mxu0 %v1133_v2  ;;  %1820 = vmatprep.mubr.msk.f32.mxu0 %vm1975_vm12, %v1974_v37 }
 0x315   :  { %1825 = vmatprep.subr.mxu1 %v1974_v37  ;;  %1821 = vmatmul.mubr.msk.f32.vlgmr.msra.gmra.mxu0 %vm929_vm3, %v1106_v27 }
 0x316   :  { %1826 = vmatpush3.msra.mxu1 %v1135_v38  ;;  %1830 = vmatprep.subr.mxu0 %v1974_v37 }
 0x317   :  { %1827 = vmatprep.mubr.msk.f32.mxu1 %vm1975_vm12, %v1974_v37  ;;  %1831 = vmatpush3.msra.mxu0 %v1138_v39 }
 0x318   :  { %1837 = vmatprep.subr.mxu1 %v1974_v37  ;;  %1828 = vmatmul.mubr.msk.f32.vlgmr.msra.gmra.mxu1 %vm929_vm3, %v1120_v59 }
 0x319   :  { %1832 = vmatprep.subr.mxu0 %v1974_v37  ;;  %1838 = vmatpush3.msra.mxu1 %v1140_v20 }
 0x31a   :  { %1833 = vmatpush3.msra.mxu0 %v1137_v57  ;;  %1834 = vmatprep.mubr.msk.f32.mxu0 %vm1975_vm12, %v1974_v37 }
 0x31b   :  { %1839 = vmatprep.subr.mxu1 %v1974_v37  ;;  %1835 = vmatmul.mubr.msk.f32.vlgmr.msra.gmra.mxu0 %vm929_vm3, %v1122_v10 }
 0x31c   :  { %1840 = vmatpush3.msra.mxu1 %v1139_v61  ;;  %1841 = vmatprep.mubr.msk.f32.mxu1 %vm1975_vm12, %v1974_v37 }
 0x31d   :  { %1842 = vmatmul.mubr.msk.f32.vlgmr.msra.gmra.mxu1 %vm929_vm3, %v1124_v52 }
 0x31e   :  { %1936 = shalt.err (!%p1933_p4)
}
 0x31f   :  { %1747 = dma.vmem_to_hbm [thread:$0]  %s1745_s10, 128, %s3103_s8, [#allocation5]   ;;  %vm1717_vm13 = vcmask 122880  }
 0x320   :  { %s1977_s8 = smov [#allocation2]  }
 0x321   :  { %s1731_s13 = sshll.u32 %s1977_s8, 4  ;;  %s1732_s13 = int_to_ptr.vmem [resolvable:$true] %s1731_s13 }
 0x322   :  { %s1945_s3 = scalar_lea.vmem %s1732_s13, 128  ;;  %p1950_p6 = scmp.lt.s32.totalorder %s1732_s13, %s1732_s13 }
 0x323   :  { %p1946_p5 = scmp.ne.s32.totalorder %s1732_s13, %s1945_s3  ;;  %p1951_p7 = scmp.lt.s32.totalorder %s1945_s3, %s1945_s3 }
 0x325   :  { %p1952_p8 = por %p1951_p7, %p1950_p6 }
 0x327   :  { %p1953_p9 = pnand %p1952_p8, %p1946_p5 }
 0x3cb   :  { %v1209_v46 = vpop.f32.mrf.mxu0 }
 0x3cc   :  { %1718 = vst.msk [vmem:[#allocation2] sm:$0x1] %vm1717_vm13, %v1209_v46 }
 0x3cd   :  { %v1794_v25 = vpop.f32.mrf.mxu0  ;;  %v1281_v40 = vpop.f32.mrf.mxu1 }
 0x3ce   :  { %1719 = vst.msk [vmem:[#allocation2 + $0x1] sm:$0x1] %vm1717_vm13, %v1281_v40 }
 0x3cf   :  { %v1801_v17 = vpop.f32.mrf.mxu1  ;;  %v1353_v32 = vpop.f32.mrf.mxu0 }
 0x3d0   :  { %1720 = vst.msk [vmem:[#allocation2 + $0x2] sm:$0x1] %vm1717_vm13, %v1353_v32 }
 0x3d1   :  { %v1808_v23 = vpop.f32.mrf.mxu0 }
 0x3d2   :  { %v1425_v6 = vpop.f32.mrf.mxu1 }
 0x3d3   :  { %1721 = vst.msk [vmem:[#allocation2 + $0x3] sm:$0x1] %vm1717_vm13, %v1425_v6 }
 0x3d4   :  { %v1815_v58 = vpop.f32.mrf.mxu1 }
 0x3d5   :  { %v1497_v4 = vpop.f32.mrf.mxu0 }
 0x3d6   :  { %1722 = vst.msk [vmem:[#allocation2 + $0x4] sm:$0x1] %vm1717_vm13, %v1497_v4 }
 0x3d7   :  { %v1822_v55 = vpop.f32.mrf.mxu0 }
 0x3d8   :  { %v1569_v13 = vpop.f32.mrf.mxu1 }
 0x3d9   :  { %1723 = vst.msk [vmem:[#allocation2 + $0x5] sm:$0x1] %vm1717_vm13, %v1569_v13 }
 0x3da   :  { %v1829_v21 = vpop.f32.mrf.mxu1 }
 0x3db   :  { %v1641_v60 = vpop.f32.mrf.mxu0 }
 0x3dc   :  { %1724 = vst.msk [vmem:[#allocation2 + $0x6] sm:$0x1] %vm1717_vm13, %v1641_v60 }
 0x3dd   :  { %v1836_v36 = vpop.f32.mrf.mxu0  ;;  %v1713_v56 = vpop.f32.mrf.mxu1 }
 0x3de   :  { %1725 = vst.msk [vmem:[#allocation2 + $0x7] sm:$0x1] %vm1717_vm13, %v1713_v56 }
 0x3df   :  { %v1843_v50 = vpop.f32.mrf.mxu1 }
 0x3e0   :  { %1956 = shalt.err (!%p1953_p9)
}
 0x3e1   :  { %s1978_s14 = smov 1  }
 0x3e2   :  { %1737 = dma.vmem_to_hbm [thread:$0]  %s1732_s13, 128, %s3102_s7, [#allocation3], %s1969_s9, %s1969_s9, %s1978_s14  }
 0x3e3   :  { %1965 = dma.done.wait [#allocation3], 128  }
 0x3e4   :  { %1966 = vsyncadd [#allocation3], 4294967168 }
 0x3e5   :  { %1967 = dma.done.wait [#allocation5], 128  }
 0x3e6   :  { %1968 = vsyncadd [#allocation5], 4294967168 }
 0x3e7   :  { %1754 = vsyncpa [#allocation3], 1 }
 0x3e8   :  { %1755 = vsyncpa [#allocation5], 1 }

</bundles_post_ra>
